<compile_context>
chip_gen: v7x
topology: tpu7x:2x2x1
jax: 0.10.0
libtpu: 0.0.40
codegen_flags: <defaults>
</compile_context>

<pallas_src>
import math
from functools import partial

import jax
import jax.numpy as jnp
from jax import lax
from jax.experimental import pallas as pl
from jax.experimental.pallas import tpu as pltpu

# ----- model dimensions (small, BERT-like) -----
B, S, H = 2, 8, 128          # batch, max_text_len(+2), hidden_size
NH, HD = 2, 64               # heads, head dim (NH * HD == H)
FFN = 256                    # intermediate size
LAYERS = 2                   # encoder layers
VOCAB = 50                   # vocab size
EPS = 1e-12                  # BERT layernorm eps
RETURN_SEQ = False           # module default: return [CLS] embedding


# --------------------------- in-kernel helpers -------------------------------
def _layernorm(x, g, b):
    mu = jnp.mean(x, axis=-1, keepdims=True)
    xc = x - mu
    var = jnp.mean(xc * xc, axis=-1, keepdims=True)
    return xc * lax.rsqrt(var + EPS) * g + b


def _gelu(y):
    # TODO(synk): HF BERT uses erf-GELU; tanh approximation used here.
    c = math.sqrt(2.0 / math.pi)
    return 0.5 * y * (1.0 + jnp.tanh(c * (y + 0.044715 * y * y * y)))


def _bf16_dot(a, w):
    # bf16 MXU matmul, f32 accumulation (weights are already stored as bf16)
    return jnp.dot(a.astype(jnp.bfloat16), w, preferred_element_type=jnp.float32)


# --------------------------- fused forward kernel ----------------------------
def _fused_kernel(tl_ref, emb_ref, emb_g_ref, emb_b_ref,
                  wqkv_ref, bqkv_ref, wo_ref, bo_ref,
                  ln1g_ref, ln1b_ref, w1_ref, b1_ref, w2_ref, b2_ref,
                  ln2g_ref, ln2b_ref, o_ref, *, return_seq):
    # embedding layernorm (no residual)
    x = _layernorm(emb_ref[...], emb_g_ref[...], emb_b_ref[...])      # (B*S, H) f32

    scale = 1.0 / math.sqrt(HD)
    kpos = lax.broadcasted_iota(jnp.int32, (1, S), 1)                  # key positions

    for l in range(LAYERS):                                            # static unroll
        # fused QKV projection: one (B*S, H) @ (H, 3H) matmul
        qkv = _bf16_dot(x, wqkv_ref[l]) + bqkv_ref[l]                  # (B*S, 3H) f32

        ctx_rows = []
        for b in range(B):                                             # static unroll
            qkv_b = qkv[b * S:(b + 1) * S, :]                          # (S, 3H)
            # additive attention mask built in-register from text_len (SMEM)
            add_mask = jnp.where(kpos < tl_ref[b], 0.0, -1e9)          # (1, S) f32
            heads = []
            for h in range(NH):                                        # static unroll
                qh = qkv_b[:, h * HD:(h + 1) * HD]                     # (S, HD)
                kh = qkv_b[:, H + h * HD:H + (h + 1) * HD]
                vh = qkv_b[:, 2 * H + h * HD:2 * H + (h + 1) * HD]
                s = lax.dot_general(
                    qh.astype(jnp.bfloat16), kh.astype(jnp.bfloat16),
                    (((1,), (1,)), ((), ())),
                    preferred_element_type=jnp.float32) * scale        # (S, S) f32
                s = s + add_mask
                m = jnp.max(s, axis=-1, keepdims=True)
                p = jnp.exp(s - m)
                p = p * pl.reciprocal(jnp.sum(p, axis=-1, keepdims=True),
                                      approx=True)
                heads.append(jnp.dot(p.astype(jnp.bfloat16),
                                     vh.astype(jnp.bfloat16),
                                     preferred_element_type=jnp.float32))
            ctx_rows.append(jnp.concatenate(heads, axis=-1))           # (S, H)
        ctx = jnp.concatenate(ctx_rows, axis=0)                        # (B*S, H)

        attn_out = _bf16_dot(ctx, wo_ref[l]) + bo_ref[l]
        x = _layernorm(attn_out + x, ln1g_ref[l], ln1b_ref[l])

        hdn = _gelu(_bf16_dot(x, w1_ref[l]) + b1_ref[l])               # f32 elementwise
        ffn_out = _bf16_dot(hdn, w2_ref[l]) + b2_ref[l]
        x = _layernorm(ffn_out + x, ln2g_ref[l], ln2b_ref[l])

    if return_seq:
        # mask2 * last_layer over the full sequence
        spos = lax.broadcasted_iota(jnp.int32, (S, 1), 0)
        rows = []
        for b in range(B):
            m2 = jnp.where(spos < tl_ref[b] - 1, 1.0, 0.0)             # (S, 1)
            rows.append(x[b * S:(b + 1) * S, :] * m2)
        o_ref[...] = jnp.concatenate(rows, axis=0)                     # (B*S, H)
    else:
        # [CLS] row only, still multiplied by mask2[:, 0] (module semantics)
        rows = []
        for b in range(B):
            m2 = (tl_ref[b] > 1).astype(jnp.float32)
            rows.append(x[b * S:b * S + 1, :] * m2)
        o_ref[...] = jnp.concatenate(rows, axis=0)                     # (B, H)


# --------------------------- parameters --------------------------------------
def init_params(key):
    keys = iter(jax.random.split(key, 64))

    def nrm(shape, scale=0.02):
        return (scale * jax.random.normal(next(keys), shape)).astype(jnp.float32)

    wqkv, bqkv, wo, bo = [], [], [], []
    ln1_g, ln1_b, w1, b1, w2, b2, ln2_g, ln2_b = [], [], [], [], [], [], [], []
    for _ in range(LAYERS):
        wq, wk, wv = nrm((H, H)), nrm((H, H)), nrm((H, H))
        wqkv.append(jnp.concatenate([wq, wk, wv], axis=1))             # (H, 3H)
        bqkv.append(jnp.zeros((1, 3 * H), jnp.float32))
        wo.append(nrm((H, H)))
        bo.append(jnp.zeros((1, H), jnp.float32))
        ln1_g.append(jnp.ones((1, H), jnp.float32))
        ln1_b.append(jnp.zeros((1, H), jnp.float32))
        w1.append(nrm((H, FFN)))
        b1.append(jnp.zeros((1, FFN), jnp.float32))
        w2.append(nrm((FFN, H)))
        b2.append(jnp.zeros((1, H), jnp.float32))
        ln2_g.append(jnp.ones((1, H), jnp.float32))
        ln2_b.append(jnp.zeros((1, H), jnp.float32))

    return {
        "word_emb": nrm((VOCAB, H)),
        "pos_emb": nrm((S, H)),
        "type_emb": nrm((2, H)),
        "emb_ln_g": jnp.ones((1, H), jnp.float32),
        "emb_ln_b": jnp.zeros((1, H), jnp.float32),
        # matmul weights stored bf16 (MXU-native, half the DMA bytes);
        # biases / LN params stay f32
        "wqkv": jnp.stack(wqkv).astype(jnp.bfloat16),                  # (L, H, 3H)
        "bqkv": jnp.stack(bqkv),                                       # (L, 1, 3H)
        "wo": jnp.stack(wo).astype(jnp.bfloat16),                      # (L, H, H)
        "bo": jnp.stack(bo),
        "ln1_g": jnp.stack(ln1_g), "ln1_b": jnp.stack(ln1_b),
        "w1": jnp.stack(w1).astype(jnp.bfloat16),                      # (L, H, FFN)
        "b1": jnp.stack(b1),
        "w2": jnp.stack(w2).astype(jnp.bfloat16),                      # (L, FFN, H)
        "b2": jnp.stack(b2),
        "ln2_g": jnp.stack(ln2_g), "ln2_b": jnp.stack(ln2_b),
    }


# --------------------------- forward (CXTEBD.get_bert) -----------------------
def _im2(i, tl):
    return (0, 0)


def _im3(i, tl):
    return (0, 0, 0)


def cxtebd_forward(params, text_ids, text_len, return_seq=RETURN_SEQ):
    # BERT embeddings (gather + adds stay in JAX glue; the rest is one kernel)
    tok = jnp.take(params["word_emb"], text_ids, axis=0)               # (B, S, H)
    emb = tok + params["pos_emb"][None] + params["type_emb"][0][None, None]
    emb = emb.reshape(B * S, H).astype(jnp.float32)

    out_rows = B * S if return_seq else B
    out_shape = jax.ShapeDtypeStruct((out_rows, H), jnp.float32)

    grid_spec = pltpu.PrefetchScalarGridSpec(
        num_scalar_prefetch=1,                                         # text_len -> SMEM
        grid=(1,),
        in_specs=[
            pl.BlockSpec((B * S, H), _im2),                            # emb
            pl.BlockSpec((1, H), _im2),                                # emb_ln_g
            pl.BlockSpec((1, H), _im2),                                # emb_ln_b
            pl.BlockSpec((LAYERS, H, 3 * H), _im3),                    # wqkv (bf16)
            pl.BlockSpec((LAYERS, 1, 3 * H), _im3),                    # bqkv
            pl.BlockSpec((LAYERS, H, H), _im3),                        # wo (bf16)
            pl.BlockSpec((LAYERS, 1, H), _im3),                        # bo
            pl.BlockSpec((LAYERS, 1, H), _im3),                        # ln1_g
            pl.BlockSpec((LAYERS, 1, H), _im3),                        # ln1_b
            pl.BlockSpec((LAYERS, H, FFN), _im3),                      # w1 (bf16)
            pl.BlockSpec((LAYERS, 1, FFN), _im3),                      # b1
            pl.BlockSpec((LAYERS, FFN, H), _im3),                      # w2 (bf16)
            pl.BlockSpec((LAYERS, 1, H), _im3),                        # b2
            pl.BlockSpec((LAYERS, 1, H), _im3),                        # ln2_g
            pl.BlockSpec((LAYERS, 1, H), _im3),                        # ln2_b
        ],
        out_specs=pl.BlockSpec((out_rows, H), _im2),
    )

    out = pl.pallas_call(
        partial(_fused_kernel, return_seq=return_seq),
        out_shape=out_shape,
        grid_spec=grid_spec,
        compiler_params=pltpu.CompilerParams(
            dimension_semantics=("arbitrary",)),
    )(text_len.astype(jnp.int32), emb,
      params["emb_ln_g"], params["emb_ln_b"],
      params["wqkv"], params["bqkv"], params["wo"], params["bo"],
      params["ln1_g"], params["ln1_b"], params["w1"], params["b1"],
      params["w2"], params["b2"], params["ln2_g"], params["ln2_b"])

    if return_seq:
        return out.reshape(B, S, H)
    return out                                                         # [CLS]: (B, H)


# --------------------------- main ---------------------------------------------
if __name__ == "__main__":
    key = jax.random.PRNGKey(0)
    pkey, ikey = jax.random.split(key)
    params = init_params(pkey)

    text_ids = jax.random.randint(ikey, (B, S), 0, VOCAB, dtype=jnp.int32)
    text_len = jnp.array([6, 4], dtype=jnp.int32)

    fwd = jax.jit(partial(cxtebd_forward, return_seq=RETURN_SEQ))
    out = fwd(params, text_ids, text_len)
    out = jax.block_until_ready(out)

    expected_shape = (B, S, H) if RETURN_SEQ else (B, H)
    assert out.shape == expected_shape, out.shape
    assert out.dtype == jnp.float32
    assert bool(jnp.all(jnp.isfinite(out)))
    print("KERNEL_OK")
</pallas_src>

<mosaic_0001>
module attributes {stable_mosaic.version = 11 : i64} {
  func.func @_fused_kernel(%arg0: i32, %arg1: memref<2xi32, #tpu.memory_space<smem>>, %arg2: memref<16x128xf32, #tpu.memory_space<vmem>>, %arg3: memref<1x128xf32, #tpu.memory_space<vmem>>, %arg4: memref<1x128xf32, #tpu.memory_space<vmem>>, %arg5: memref<2x128x384xbf16, #tpu.memory_space<vmem>>, %arg6: memref<2x1x384xf32, #tpu.memory_space<vmem>>, %arg7: memref<2x128x128xbf16, #tpu.memory_space<vmem>>, %arg8: memref<2x1x128xf32, #tpu.memory_space<vmem>>, %arg9: memref<2x1x128xf32, #tpu.memory_space<vmem>>, %arg10: memref<2x1x128xf32, #tpu.memory_space<vmem>>, %arg11: memref<2x128x256xbf16, #tpu.memory_space<vmem>>, %arg12: memref<2x1x256xf32, #tpu.memory_space<vmem>>, %arg13: memref<2x256x128xbf16, #tpu.memory_space<vmem>>, %arg14: memref<2x1x128xf32, #tpu.memory_space<vmem>>, %arg15: memref<2x1x128xf32, #tpu.memory_space<vmem>>, %arg16: memref<2x1x128xf32, #tpu.memory_space<vmem>>, %arg17: memref<2x128xf32, #tpu.memory_space<vmem>>) attributes {dimension_semantics = [#tpu.dimension_semantics<arbitrary>], iteration_bounds = array<i64: 1>, scalar_prefetch = 1 : i64, scratch_operands = 0 : i64, tpu.core_type = #tpu.core_type<tc>, window_params = [{pipeline_mode = #tpu.pipeline_mode<synchronous>, transform_indices = @transform_0, window_bounds = array<i64: 16, 128>}, {pipeline_mode = #tpu.pipeline_mode<synchronous>, transform_indices = @transform_1, window_bounds = array<i64: 1, 128>}, {pipeline_mode = #tpu.pipeline_mode<synchronous>, transform_indices = @transform_2, window_bounds = array<i64: 1, 128>}, {pipeline_mode = #tpu.pipeline_mode<synchronous>, transform_indices = @transform_3, window_bounds = array<i64: 2, 128, 384>}, {pipeline_mode = #tpu.pipeline_mode<synchronous>, transform_indices = @transform_4, window_bounds = array<i64: 2, 1, 384>}, {pipeline_mode = #tpu.pipeline_mode<synchronous>, transform_indices = @transform_5, window_bounds = array<i64: 2, 128, 128>}, {pipeline_mode = #tpu.pipeline_mode<synchronous>, transform_indices = @transform_6, window_bounds = array<i64: 2, 1, 128>}, {pipeline_mode = #tpu.pipeline_mode<synchronous>, transform_indices = @transform_7, window_bounds = array<i64: 2, 1, 128>}, {pipeline_mode = #tpu.pipeline_mode<synchronous>, transform_indices = @transform_8, window_bounds = array<i64: 2, 1, 128>}, {pipeline_mode = #tpu.pipeline_mode<synchronous>, transform_indices = @transform_9, window_bounds = array<i64: 2, 128, 256>}, {pipeline_mode = #tpu.pipeline_mode<synchronous>, transform_indices = @transform_10, window_bounds = array<i64: 2, 1, 256>}, {pipeline_mode = #tpu.pipeline_mode<synchronous>, transform_indices = @transform_11, window_bounds = array<i64: 2, 256, 128>}, {pipeline_mode = #tpu.pipeline_mode<synchronous>, transform_indices = @transform_12, window_bounds = array<i64: 2, 1, 128>}, {pipeline_mode = #tpu.pipeline_mode<synchronous>, transform_indices = @transform_13, window_bounds = array<i64: 2, 1, 128>}, {pipeline_mode = #tpu.pipeline_mode<synchronous>, transform_indices = @transform_14, window_bounds = array<i64: 2, 1, 128>}, {pipeline_mode = #tpu.pipeline_mode<synchronous>, transform_indices = @transform_15, window_bounds = array<i64: 2, 128>}]} {
    %c0 = arith.constant 0 : index
    %c0_0 = arith.constant 0 : index
    %0 = vector.load %arg2[%c0, %c0_0] : memref<16x128xf32, #tpu.memory_space<vmem>>, vector<16x128xf32>
    %c0_1 = arith.constant 0 : index
    %c0_2 = arith.constant 0 : index
    %1 = vector.load %arg3[%c0_1, %c0_2] : memref<1x128xf32, #tpu.memory_space<vmem>>, vector<1x128xf32>
    %c0_3 = arith.constant 0 : index
    %c0_4 = arith.constant 0 : index
    %2 = vector.load %arg4[%c0_3, %c0_4] : memref<1x128xf32, #tpu.memory_space<vmem>>, vector<1x128xf32>
    %cst = arith.constant dense<0.000000e+00> : vector<16xf32>
    %3 = vector.multi_reduction <add>, %0, %cst [1] : vector<16x128xf32> to vector<16xf32>
    %4 = vector.shape_cast %3 : vector<16xf32> to vector<16x1xf32>
    %cst_5 = arith.constant 1.280000e+02 : f32
    %5 = vector.broadcast %cst_5 : f32 to vector<16x1xf32>
    %6 = arith.divf %4, %5 : vector<16x1xf32>
    %7 = vector.broadcast %6 : vector<16x1xf32> to vector<16x128xf32>
    %8 = arith.subf %0, %7 : vector<16x128xf32>
    %9 = arith.mulf %8, %8 : vector<16x128xf32>
    %cst_6 = arith.constant dense<0.000000e+00> : vector<16xf32>
    %10 = vector.multi_reduction <add>, %9, %cst_6 [1] : vector<16x128xf32> to vector<16xf32>
    %11 = vector.shape_cast %10 : vector<16xf32> to vector<16x1xf32>
    %cst_7 = arith.constant 1.280000e+02 : f32
    %12 = vector.broadcast %cst_7 : f32 to vector<16x1xf32>
    %13 = arith.divf %11, %12 : vector<16x1xf32>
    %cst_8 = arith.constant 9.99999996E-13 : f32
    %14 = vector.broadcast %cst_8 : f32 to vector<16x1xf32>
    %15 = arith.addf %13, %14 : vector<16x1xf32>
    %16 = math.rsqrt %15 : vector<16x1xf32>
    %17 = vector.broadcast %16 : vector<16x1xf32> to vector<16x128xf32>
    %18 = arith.mulf %8, %17 : vector<16x128xf32>
    %19 = vector.broadcast %1 : vector<1x128xf32> to vector<16x128xf32>
    %20 = arith.mulf %18, %19 : vector<16x128xf32>
    %21 = vector.broadcast %2 : vector<1x128xf32> to vector<16x128xf32>
    %22 = arith.addf %20, %21 : vector<16x128xf32>
    %23 = tpu.iota {dimensions = array<i32: 1>} : vector<1x8xi32>
    %c0_9 = arith.constant 0 : index
    %c0_10 = arith.constant 0 : index
    %c0_11 = arith.constant 0 : index
    %24 = vector.load %arg5[%c0_9, %c0_10, %c0_11] : memref<2x128x384xbf16, #tpu.memory_space<vmem>>, vector<1x128x384xbf16>
    %25 = vector.shape_cast %24 : vector<1x128x384xbf16> to vector<128x384xbf16>
    %26 = arith.truncf %22 : vector<16x128xf32> to vector<16x128xbf16>
    %cst_12 = arith.constant dense<0.000000e+00> : vector<16x384xf32>
    %27 = tpu.matmul %26, %25, %cst_12 {dimension_numbers = #tpu.dot_dimension_numbers<[1], [0], [0], [1], [0, 0, 1, 1], [], []>} : vector<16x128xbf16>, vector<128x384xbf16>, vector<16x384xf32> -> vector<16x384xf32>
    %c0_13 = arith.constant 0 : index
    %c0_14 = arith.constant 0 : index
    %c0_15 = arith.constant 0 : index
    %28 = vector.load %arg6[%c0_13, %c0_14, %c0_15] : memref<2x1x384xf32, #tpu.memory_space<vmem>>, vector<1x1x384xf32>
    %29 = vector.shape_cast %28 : vector<1x1x384xf32> to vector<1x384xf32>
    %30 = vector.broadcast %29 : vector<1x384xf32> to vector<16x384xf32>
    %31 = arith.addf %27, %30 : vector<16x384xf32>
    %32 = vector.extract_strided_slice %31 {offsets = [0, 0], sizes = [8, 384], strides = [1, 1]} : vector<16x384xf32> to vector<8x384xf32>
    %c0_16 = arith.constant 0 : index
    %33 = memref.load %arg1[%c0_16] : memref<2xi32, #tpu.memory_space<smem>>
    %34 = vector.broadcast %33 : i32 to vector<1x8xi32>
    %35 = arith.cmpi slt, %23, %34 : vector<1x8xi32>
    %cst_17 = arith.constant 0.000000e+00 : f32
    %cst_18 = arith.constant -1.000000e+09 : f32
    %36 = vector.broadcast %cst_17 : f32 to vector<1x8xf32>
    %37 = vector.broadcast %cst_18 : f32 to vector<1x8xf32>
    %38 = arith.select %35, %36, %37 : vector<1x8xi1>, vector<1x8xf32>
    %39 = vector.extract_strided_slice %32 {offsets = [0, 0], sizes = [8, 64], strides = [1, 1]} : vector<8x384xf32> to vector<8x64xf32>
    %40 = vector.extract_strided_slice %32 {offsets = [0, 128], sizes = [8, 64], strides = [1, 1]} : vector<8x384xf32> to vector<8x64xf32>
    %41 = vector.extract_strided_slice %32 {offsets = [0, 256], sizes = [8, 64], strides = [1, 1]} : vector<8x384xf32> to vector<8x64xf32>
    %42 = arith.truncf %39 : vector<8x64xf32> to vector<8x64xbf16>
    %43 = arith.truncf %40 : vector<8x64xf32> to vector<8x64xbf16>
    %cst_19 = arith.constant dense<0.000000e+00> : vector<8x8xf32>
    %44 = tpu.matmul %42, %43, %cst_19 {dimension_numbers = #tpu.dot_dimension_numbers<[1], [1], [0], [0], [0, 0, 1, 0], [], []>} : vector<8x64xbf16>, vector<8x64xbf16>, vector<8x8xf32> -> vector<8x8xf32>
    %cst_20 = arith.constant 1.250000e-01 : f32
    %45 = vector.broadcast %cst_20 : f32 to vector<8x8xf32>
    %46 = arith.mulf %44, %45 : vector<8x8xf32>
    %47 = vector.broadcast %38 : vector<1x8xf32> to vector<8x8xf32>
    %48 = arith.addf %46, %47 : vector<8x8xf32>
    %cst_21 = arith.constant dense<0xFF800000> : vector<8xf32>
    %49 = vector.multi_reduction <maximumf>, %48, %cst_21 [1] : vector<8x8xf32> to vector<8xf32>
    %50 = vector.shape_cast %49 : vector<8xf32> to vector<8x1xf32>
    %51 = vector.broadcast %50 : vector<8x1xf32> to vector<8x8xf32>
    %52 = arith.subf %48, %51 : vector<8x8xf32>
    %53 = math.exp %52 : vector<8x8xf32>
    %cst_22 = arith.constant dense<0.000000e+00> : vector<8xf32>
    %54 = vector.multi_reduction <add>, %53, %cst_22 [1] : vector<8x8xf32> to vector<8xf32>
    %55 = vector.shape_cast %54 : vector<8xf32> to vector<8x1xf32>
    %56 = tpu.reciprocal %55 {approx = true} : vector<8x1xf32> -> vector<8x1xf32>
    %57 = vector.broadcast %56 : vector<8x1xf32> to vector<8x8xf32>
    %58 = arith.mulf %53, %57 : vector<8x8xf32>
    %59 = arith.truncf %58 : vector<8x8xf32> to vector<8x8xbf16>
    %60 = arith.truncf %41 : vector<8x64xf32> to vector<8x64xbf16>
    %cst_23 = arith.constant dense<0.000000e+00> : vector<8x64xf32>
    %61 = tpu.matmul %59, %60, %cst_23 {dimension_numbers = #tpu.dot_dimension_numbers<[1], [0], [0], [1], [0, 0, 1, 1], [], []>} : vector<8x8xbf16>, vector<8x64xbf16>, vector<8x64xf32> -> vector<8x64xf32>
    %62 = vector.extract_strided_slice %32 {offsets = [0, 64], sizes = [8, 64], strides = [1, 1]} : vector<8x384xf32> to vector<8x64xf32>
    %63 = vector.extract_strided_slice %32 {offsets = [0, 192], sizes = [8, 64], strides = [1, 1]} : vector<8x384xf32> to vector<8x64xf32>
    %64 = vector.extract_strided_slice %32 {offsets = [0, 320], sizes = [8, 64], strides = [1, 1]} : vector<8x384xf32> to vector<8x64xf32>
    %65 = arith.truncf %62 : vector<8x64xf32> to vector<8x64xbf16>
    %66 = arith.truncf %63 : vector<8x64xf32> to vector<8x64xbf16>
    %cst_24 = arith.constant dense<0.000000e+00> : vector<8x8xf32>
    %67 = tpu.matmul %65, %66, %cst_24 {dimension_numbers = #tpu.dot_dimension_numbers<[1], [1], [0], [0], [0, 0, 1, 0], [], []>} : vector<8x64xbf16>, vector<8x64xbf16>, vector<8x8xf32> -> vector<8x8xf32>
    %cst_25 = arith.constant 1.250000e-01 : f32
    %68 = vector.broadcast %cst_25 : f32 to vector<8x8xf32>
    %69 = arith.mulf %67, %68 : vector<8x8xf32>
    %70 = vector.broadcast %38 : vector<1x8xf32> to vector<8x8xf32>
    %71 = arith.addf %69, %70 : vector<8x8xf32>
    %cst_26 = arith.constant dense<0xFF800000> : vector<8xf32>
    %72 = vector.multi_reduction <maximumf>, %71, %cst_26 [1] : vector<8x8xf32> to vector<8xf32>
    %73 = vector.shape_cast %72 : vector<8xf32> to vector<8x1xf32>
    %74 = vector.broadcast %73 : vector<8x1xf32> to vector<8x8xf32>
    %75 = arith.subf %71, %74 : vector<8x8xf32>
    %76 = math.exp %75 : vector<8x8xf32>
    %cst_27 = arith.constant dense<0.000000e+00> : vector<8xf32>
    %77 = vector.multi_reduction <add>, %76, %cst_27 [1] : vector<8x8xf32> to vector<8xf32>
    %78 = vector.shape_cast %77 : vector<8xf32> to vector<8x1xf32>
    %79 = tpu.reciprocal %78 {approx = true} : vector<8x1xf32> -> vector<8x1xf32>
    %80 = vector.broadcast %79 : vector<8x1xf32> to vector<8x8xf32>
    %81 = arith.mulf %76, %80 : vector<8x8xf32>
    %82 = arith.truncf %81 : vector<8x8xf32> to vector<8x8xbf16>
    %83 = arith.truncf %64 : vector<8x64xf32> to vector<8x64xbf16>
    %cst_28 = arith.constant dense<0.000000e+00> : vector<8x64xf32>
    %84 = tpu.matmul %82, %83, %cst_28 {dimension_numbers = #tpu.dot_dimension_numbers<[1], [0], [0], [1], [0, 0, 1, 1], [], []>} : vector<8x8xbf16>, vector<8x64xbf16>, vector<8x64xf32> -> vector<8x64xf32>
    %85 = tpu.concatenate %61, %84 in 1 : vector<8x64xf32>, vector<8x64xf32> -> vector<8x128xf32>
    %86 = vector.extract_strided_slice %31 {offsets = [8, 0], sizes = [8, 384], strides = [1, 1]} : vector<16x384xf32> to vector<8x384xf32>
    %c1 = arith.constant 1 : index
    %87 = memref.load %arg1[%c1] : memref<2xi32, #tpu.memory_space<smem>>
    %88 = vector.broadcast %87 : i32 to vector<1x8xi32>
    %89 = arith.cmpi slt, %23, %88 : vector<1x8xi32>
    %cst_29 = arith.constant 0.000000e+00 : f32
    %cst_30 = arith.constant -1.000000e+09 : f32
    %90 = vector.broadcast %cst_29 : f32 to vector<1x8xf32>
    %91 = vector.broadcast %cst_30 : f32 to vector<1x8xf32>
    %92 = arith.select %89, %90, %91 : vector<1x8xi1>, vector<1x8xf32>
    %93 = vector.extract_strided_slice %86 {offsets = [0, 0], sizes = [8, 64], strides = [1, 1]} : vector<8x384xf32> to vector<8x64xf32>
    %94 = vector.extract_strided_slice %86 {offsets = [0, 128], sizes = [8, 64], strides = [1, 1]} : vector<8x384xf32> to vector<8x64xf32>
    %95 = vector.extract_strided_slice %86 {offsets = [0, 256], sizes = [8, 64], strides = [1, 1]} : vector<8x384xf32> to vector<8x64xf32>
    %96 = arith.truncf %93 : vector<8x64xf32> to vector<8x64xbf16>
    %97 = arith.truncf %94 : vector<8x64xf32> to vector<8x64xbf16>
    %cst_31 = arith.constant dense<0.000000e+00> : vector<8x8xf32>
    %98 = tpu.matmul %96, %97, %cst_31 {dimension_numbers = #tpu.dot_dimension_numbers<[1], [1], [0], [0], [0, 0, 1, 0], [], []>} : vector<8x64xbf16>, vector<8x64xbf16>, vector<8x8xf32> -> vector<8x8xf32>
    %cst_32 = arith.constant 1.250000e-01 : f32
    %99 = vector.broadcast %cst_32 : f32 to vector<8x8xf32>
    %100 = arith.mulf %98, %99 : vector<8x8xf32>
    %101 = vector.broadcast %92 : vector<1x8xf32> to vector<8x8xf32>
    %102 = arith.addf %100, %101 : vector<8x8xf32>
    %cst_33 = arith.constant dense<0xFF800000> : vector<8xf32>
    %103 = vector.multi_reduction <maximumf>, %102, %cst_33 [1] : vector<8x8xf32> to vector<8xf32>
    %104 = vector.shape_cast %103 : vector<8xf32> to vector<8x1xf32>
    %105 = vector.broadcast %104 : vector<8x1xf32> to vector<8x8xf32>
    %106 = arith.subf %102, %105 : vector<8x8xf32>
    %107 = math.exp %106 : vector<8x8xf32>
    %cst_34 = arith.constant dense<0.000000e+00> : vector<8xf32>
    %108 = vector.multi_reduction <add>, %107, %cst_34 [1] : vector<8x8xf32> to vector<8xf32>
    %109 = vector.shape_cast %108 : vector<8xf32> to vector<8x1xf32>
    %110 = tpu.reciprocal %109 {approx = true} : vector<8x1xf32> -> vector<8x1xf32>
    %111 = vector.broadcast %110 : vector<8x1xf32> to vector<8x8xf32>
    %112 = arith.mulf %107, %111 : vector<8x8xf32>
    %113 = arith.truncf %112 : vector<8x8xf32> to vector<8x8xbf16>
    %114 = arith.truncf %95 : vector<8x64xf32> to vector<8x64xbf16>
    %cst_35 = arith.constant dense<0.000000e+00> : vector<8x64xf32>
    %115 = tpu.matmul %113, %114, %cst_35 {dimension_numbers = #tpu.dot_dimension_numbers<[1], [0], [0], [1], [0, 0, 1, 1], [], []>} : vector<8x8xbf16>, vector<8x64xbf16>, vector<8x64xf32> -> vector<8x64xf32>
    %116 = vector.extract_strided_slice %86 {offsets = [0, 64], sizes = [8, 64], strides = [1, 1]} : vector<8x384xf32> to vector<8x64xf32>
    %117 = vector.extract_strided_slice %86 {offsets = [0, 192], sizes = [8, 64], strides = [1, 1]} : vector<8x384xf32> to vector<8x64xf32>
    %118 = vector.extract_strided_slice %86 {offsets = [0, 320], sizes = [8, 64], strides = [1, 1]} : vector<8x384xf32> to vector<8x64xf32>
    %119 = arith.truncf %116 : vector<8x64xf32> to vector<8x64xbf16>
    %120 = arith.truncf %117 : vector<8x64xf32> to vector<8x64xbf16>
    %cst_36 = arith.constant dense<0.000000e+00> : vector<8x8xf32>
    %121 = tpu.matmul %119, %120, %cst_36 {dimension_numbers = #tpu.dot_dimension_numbers<[1], [1], [0], [0], [0, 0, 1, 0], [], []>} : vector<8x64xbf16>, vector<8x64xbf16>, vector<8x8xf32> -> vector<8x8xf32>
    %cst_37 = arith.constant 1.250000e-01 : f32
    %122 = vector.broadcast %cst_37 : f32 to vector<8x8xf32>
    %123 = arith.mulf %121, %122 : vector<8x8xf32>
    %124 = vector.broadcast %92 : vector<1x8xf32> to vector<8x8xf32>
    %125 = arith.addf %123, %124 : vector<8x8xf32>
    %cst_38 = arith.constant dense<0xFF800000> : vector<8xf32>
    %126 = vector.multi_reduction <maximumf>, %125, %cst_38 [1] : vector<8x8xf32> to vector<8xf32>
    %127 = vector.shape_cast %126 : vector<8xf32> to vector<8x1xf32>
    %128 = vector.broadcast %127 : vector<8x1xf32> to vector<8x8xf32>
    %129 = arith.subf %125, %128 : vector<8x8xf32>
    %130 = math.exp %129 : vector<8x8xf32>
    %cst_39 = arith.constant dense<0.000000e+00> : vector<8xf32>
    %131 = vector.multi_reduction <add>, %130, %cst_39 [1] : vector<8x8xf32> to vector<8xf32>
    %132 = vector.shape_cast %131 : vector<8xf32> to vector<8x1xf32>
    %133 = tpu.reciprocal %132 {approx = true} : vector<8x1xf32> -> vector<8x1xf32>
    %134 = vector.broadcast %133 : vector<8x1xf32> to vector<8x8xf32>
    %135 = arith.mulf %130, %134 : vector<8x8xf32>
    %136 = arith.truncf %135 : vector<8x8xf32> to vector<8x8xbf16>
    %137 = arith.truncf %118 : vector<8x64xf32> to vector<8x64xbf16>
    %cst_40 = arith.constant dense<0.000000e+00> : vector<8x64xf32>
    %138 = tpu.matmul %136, %137, %cst_40 {dimension_numbers = #tpu.dot_dimension_numbers<[1], [0], [0], [1], [0, 0, 1, 1], [], []>} : vector<8x8xbf16>, vector<8x64xbf16>, vector<8x64xf32> -> vector<8x64xf32>
    %139 = tpu.concatenate %115, %138 in 1 : vector<8x64xf32>, vector<8x64xf32> -> vector<8x128xf32>
    %140 = tpu.concatenate %85, %139 in 0 : vector<8x128xf32>, vector<8x128xf32> -> vector<16x128xf32>
    %c0_41 = arith.constant 0 : index
    %c0_42 = arith.constant 0 : index
    %c0_43 = arith.constant 0 : index
    %141 = vector.load %arg7[%c0_41, %c0_42, %c0_43] : memref<2x128x128xbf16, #tpu.memory_space<vmem>>, vector<1x128x128xbf16>
    %142 = vector.shape_cast %141 : vector<1x128x128xbf16> to vector<128x128xbf16>
    %143 = arith.truncf %140 : vector<16x128xf32> to vector<16x128xbf16>
    %cst_44 = arith.constant dense<0.000000e+00> : vector<16x128xf32>
    %144 = tpu.matmul %143, %142, %cst_44 {dimension_numbers = #tpu.dot_dimension_numbers<[1], [0], [0], [1], [0, 0, 1, 1], [], []>} : vector<16x128xbf16>, vector<128x128xbf16>, vector<16x128xf32> -> vector<16x128xf32>
    %c0_45 = arith.constant 0 : index
    %c0_46 = arith.constant 0 : index
    %c0_47 = arith.constant 0 : index
    %145 = vector.load %arg8[%c0_45, %c0_46, %c0_47] : memref<2x1x128xf32, #tpu.memory_space<vmem>>, vector<1x1x128xf32>
    %146 = vector.shape_cast %145 : vector<1x1x128xf32> to vector<1x128xf32>
    %147 = vector.broadcast %146 : vector<1x128xf32> to vector<16x128xf32>
    %148 = arith.addf %144, %147 : vector<16x128xf32>
    %149 = arith.addf %148, %22 : vector<16x128xf32>
    %c0_48 = arith.constant 0 : index
    %c0_49 = arith.constant 0 : index
    %c0_50 = arith.constant 0 : index
    %150 = vector.load %arg9[%c0_48, %c0_49, %c0_50] : memref<2x1x128xf32, #tpu.memory_space<vmem>>, vector<1x1x128xf32>
    %151 = vector.shape_cast %150 : vector<1x1x128xf32> to vector<1x128xf32>
    %c0_51 = arith.constant 0 : index
    %c0_52 = arith.constant 0 : index
    %c0_53 = arith.constant 0 : index
    %152 = vector.load %arg10[%c0_51, %c0_52, %c0_53] : memref<2x1x128xf32, #tpu.memory_space<vmem>>, vector<1x1x128xf32>
    %153 = vector.shape_cast %152 : vector<1x1x128xf32> to vector<1x128xf32>
    %cst_54 = arith.constant dense<0.000000e+00> : vector<16xf32>
    %154 = vector.multi_reduction <add>, %149, %cst_54 [1] : vector<16x128xf32> to vector<16xf32>
    %155 = vector.shape_cast %154 : vector<16xf32> to vector<16x1xf32>
    %cst_55 = arith.constant 1.280000e+02 : f32
    %156 = vector.broadcast %cst_55 : f32 to vector<16x1xf32>
    %157 = arith.divf %155, %156 : vector<16x1xf32>
    %158 = vector.broadcast %157 : vector<16x1xf32> to vector<16x128xf32>
    %159 = arith.subf %149, %158 : vector<16x128xf32>
    %160 = arith.mulf %159, %159 : vector<16x128xf32>
    %cst_56 = arith.constant dense<0.000000e+00> : vector<16xf32>
    %161 = vector.multi_reduction <add>, %160, %cst_56 [1] : vector<16x128xf32> to vector<16xf32>
    %162 = vector.shape_cast %161 : vector<16xf32> to vector<16x1xf32>
    %cst_57 = arith.constant 1.280000e+02 : f32
    %163 = vector.broadcast %cst_57 : f32 to vector<16x1xf32>
    %164 = arith.divf %162, %163 : vector<16x1xf32>
    %cst_58 = arith.constant 9.99999996E-13 : f32
    %165 = vector.broadcast %cst_58 : f32 to vector<16x1xf32>
    %166 = arith.addf %164, %165 : vector<16x1xf32>
    %167 = math.rsqrt %166 : vector<16x1xf32>
    %168 = vector.broadcast %167 : vector<16x1xf32> to vector<16x128xf32>
    %169 = arith.mulf %159, %168 : vector<16x128xf32>
    %170 = vector.broadcast %151 : vector<1x128xf32> to vector<16x128xf32>
    %171 = arith.mulf %169, %170 : vector<16x128xf32>
    %172 = vector.broadcast %153 : vector<1x128xf32> to vector<16x128xf32>
    %173 = arith.addf %171, %172 : vector<16x128xf32>
    %c0_59 = arith.constant 0 : index
    %c0_60 = arith.constant 0 : index
    %c0_61 = arith.constant 0 : index
    %174 = vector.load %arg11[%c0_59, %c0_60, %c0_61] : memref<2x128x256xbf16, #tpu.memory_space<vmem>>, vector<1x128x256xbf16>
    %175 = vector.shape_cast %174 : vector<1x128x256xbf16> to vector<128x256xbf16>
    %176 = arith.truncf %173 : vector<16x128xf32> to vector<16x128xbf16>
    %cst_62 = arith.constant dense<0.000000e+00> : vector<16x256xf32>
    %177 = tpu.matmul %176, %175, %cst_62 {dimension_numbers = #tpu.dot_dimension_numbers<[1], [0], [0], [1], [0, 0, 1, 1], [], []>} : vector<16x128xbf16>, vector<128x256xbf16>, vector<16x256xf32> -> vector<16x256xf32>
    %c0_63 = arith.constant 0 : index
    %c0_64 = arith.constant 0 : index
    %c0_65 = arith.constant 0 : index
    %178 = vector.load %arg12[%c0_63, %c0_64, %c0_65] : memref<2x1x256xf32, #tpu.memory_space<vmem>>, vector<1x1x256xf32>
    %179 = vector.shape_cast %178 : vector<1x1x256xf32> to vector<1x256xf32>
    %180 = vector.broadcast %179 : vector<1x256xf32> to vector<16x256xf32>
    %181 = arith.addf %177, %180 : vector<16x256xf32>
    %cst_66 = arith.constant 5.000000e-01 : f32
    %182 = vector.broadcast %cst_66 : f32 to vector<16x256xf32>
    %183 = arith.mulf %182, %181 : vector<16x256xf32>
    %cst_67 = arith.constant 4.471500e-02 : f32
    %184 = vector.broadcast %cst_67 : f32 to vector<16x256xf32>
    %185 = arith.mulf %184, %181 : vector<16x256xf32>
    %186 = arith.mulf %185, %181 : vector<16x256xf32>
    %187 = arith.mulf %186, %181 : vector<16x256xf32>
    %188 = arith.addf %181, %187 : vector<16x256xf32>
    %cst_68 = arith.constant 0.797884583 : f32
    %189 = vector.broadcast %cst_68 : f32 to vector<16x256xf32>
    %190 = arith.mulf %189, %188 : vector<16x256xf32>
    %191 = math.tanh %190 : vector<16x256xf32>
    %cst_69 = arith.constant 1.000000e+00 : f32
    %192 = vector.broadcast %cst_69 : f32 to vector<16x256xf32>
    %193 = arith.addf %192, %191 : vector<16x256xf32>
    %194 = arith.mulf %183, %193 : vector<16x256xf32>
    %c0_70 = arith.constant 0 : index
    %c0_71 = arith.constant 0 : index
    %c0_72 = arith.constant 0 : index
    %195 = vector.load %arg13[%c0_70, %c0_71, %c0_72] : memref<2x256x128xbf16, #tpu.memory_space<vmem>>, vector<1x256x128xbf16>
    %196 = vector.shape_cast %195 : vector<1x256x128xbf16> to vector<256x128xbf16>
    %197 = arith.truncf %194 : vector<16x256xf32> to vector<16x256xbf16>
    %cst_73 = arith.constant dense<0.000000e+00> : vector<16x128xf32>
    %198 = tpu.matmul %197, %196, %cst_73 {dimension_numbers = #tpu.dot_dimension_numbers<[1], [0], [0], [1], [0, 0, 1, 1], [], []>} : vector<16x256xbf16>, vector<256x128xbf16>, vector<16x128xf32> -> vector<16x128xf32>
    %c0_74 = arith.constant 0 : index
    %c0_75 = arith.constant 0 : index
    %c0_76 = arith.constant 0 : index
    %199 = vector.load %arg14[%c0_74, %c0_75, %c0_76] : memref<2x1x128xf32, #tpu.memory_space<vmem>>, vector<1x1x128xf32>
    %200 = vector.shape_cast %199 : vector<1x1x128xf32> to vector<1x128xf32>
    %201 = vector.broadcast %200 : vector<1x128xf32> to vector<16x128xf32>
    %202 = arith.addf %198, %201 : vector<16x128xf32>
    %203 = arith.addf %202, %173 : vector<16x128xf32>
    %c0_77 = arith.constant 0 : index
    %c0_78 = arith.constant 0 : index
    %c0_79 = arith.constant 0 : index
    %204 = vector.load %arg15[%c0_77, %c0_78, %c0_79] : memref<2x1x128xf32, #tpu.memory_space<vmem>>, vector<1x1x128xf32>
    %205 = vector.shape_cast %204 : vector<1x1x128xf32> to vector<1x128xf32>
    %c0_80 = arith.constant 0 : index
    %c0_81 = arith.constant 0 : index
    %c0_82 = arith.constant 0 : index
    %206 = vector.load %arg16[%c0_80, %c0_81, %c0_82] : memref<2x1x128xf32, #tpu.memory_space<vmem>>, vector<1x1x128xf32>
    %207 = vector.shape_cast %206 : vector<1x1x128xf32> to vector<1x128xf32>
    %cst_83 = arith.constant dense<0.000000e+00> : vector<16xf32>
    %208 = vector.multi_reduction <add>, %203, %cst_83 [1] : vector<16x128xf32> to vector<16xf32>
    %209 = vector.shape_cast %208 : vector<16xf32> to vector<16x1xf32>
    %cst_84 = arith.constant 1.280000e+02 : f32
    %210 = vector.broadcast %cst_84 : f32 to vector<16x1xf32>
    %211 = arith.divf %209, %210 : vector<16x1xf32>
    %212 = vector.broadcast %211 : vector<16x1xf32> to vector<16x128xf32>
    %213 = arith.subf %203, %212 : vector<16x128xf32>
    %214 = arith.mulf %213, %213 : vector<16x128xf32>
    %cst_85 = arith.constant dense<0.000000e+00> : vector<16xf32>
    %215 = vector.multi_reduction <add>, %214, %cst_85 [1] : vector<16x128xf32> to vector<16xf32>
    %216 = vector.shape_cast %215 : vector<16xf32> to vector<16x1xf32>
    %cst_86 = arith.constant 1.280000e+02 : f32
    %217 = vector.broadcast %cst_86 : f32 to vector<16x1xf32>
    %218 = arith.divf %216, %217 : vector<16x1xf32>
    %cst_87 = arith.constant 9.99999996E-13 : f32
    %219 = vector.broadcast %cst_87 : f32 to vector<16x1xf32>
    %220 = arith.addf %218, %219 : vector<16x1xf32>
    %221 = math.rsqrt %220 : vector<16x1xf32>
    %222 = vector.broadcast %221 : vector<16x1xf32> to vector<16x128xf32>
    %223 = arith.mulf %213, %222 : vector<16x128xf32>
    %224 = vector.broadcast %205 : vector<1x128xf32> to vector<16x128xf32>
    %225 = arith.mulf %223, %224 : vector<16x128xf32>
    %226 = vector.broadcast %207 : vector<1x128xf32> to vector<16x128xf32>
    %227 = arith.addf %225, %226 : vector<16x128xf32>
    %c1_88 = arith.constant 1 : index
    %c0_89 = arith.constant 0 : index
    %c0_90 = arith.constant 0 : index
    %228 = vector.load %arg5[%c1_88, %c0_89, %c0_90] : memref<2x128x384xbf16, #tpu.memory_space<vmem>>, vector<1x128x384xbf16>
    %229 = vector.shape_cast %228 : vector<1x128x384xbf16> to vector<128x384xbf16>
    %230 = arith.truncf %227 : vector<16x128xf32> to vector<16x128xbf16>
    %cst_91 = arith.constant dense<0.000000e+00> : vector<16x384xf32>
    %231 = tpu.matmul %230, %229, %cst_91 {dimension_numbers = #tpu.dot_dimension_numbers<[1], [0], [0], [1], [0, 0, 1, 1], [], []>} : vector<16x128xbf16>, vector<128x384xbf16>, vector<16x384xf32> -> vector<16x384xf32>
    %c1_92 = arith.constant 1 : index
    %c0_93 = arith.constant 0 : index
    %c0_94 = arith.constant 0 : index
    %232 = vector.load %arg6[%c1_92, %c0_93, %c0_94] : memref<2x1x384xf32, #tpu.memory_space<vmem>>, vector<1x1x384xf32>
    %233 = vector.shape_cast %232 : vector<1x1x384xf32> to vector<1x384xf32>
    %234 = vector.broadcast %233 : vector<1x384xf32> to vector<16x384xf32>
    %235 = arith.addf %231, %234 : vector<16x384xf32>
    %236 = vector.extract_strided_slice %235 {offsets = [0, 0], sizes = [8, 384], strides = [1, 1]} : vector<16x384xf32> to vector<8x384xf32>
    %c0_95 = arith.constant 0 : index
    %237 = memref.load %arg1[%c0_95] : memref<2xi32, #tpu.memory_space<smem>>
    %238 = vector.broadcast %237 : i32 to vector<1x8xi32>
    %239 = arith.cmpi slt, %23, %238 : vector<1x8xi32>
    %cst_96 = arith.constant 0.000000e+00 : f32
    %cst_97 = arith.constant -1.000000e+09 : f32
    %240 = vector.broadcast %cst_96 : f32 to vector<1x8xf32>
    %241 = vector.broadcast %cst_97 : f32 to vector<1x8xf32>
    %242 = arith.select %239, %240, %241 : vector<1x8xi1>, vector<1x8xf32>
    %243 = vector.extract_strided_slice %236 {offsets = [0, 0], sizes = [8, 64], strides = [1, 1]} : vector<8x384xf32> to vector<8x64xf32>
    %244 = vector.extract_strided_slice %236 {offsets = [0, 128], sizes = [8, 64], strides = [1, 1]} : vector<8x384xf32> to vector<8x64xf32>
    %245 = vector.extract_strided_slice %236 {offsets = [0, 256], sizes = [8, 64], strides = [1, 1]} : vector<8x384xf32> to vector<8x64xf32>
    %246 = arith.truncf %243 : vector<8x64xf32> to vector<8x64xbf16>
    %247 = arith.truncf %244 : vector<8x64xf32> to vector<8x64xbf16>
    %cst_98 = arith.constant dense<0.000000e+00> : vector<8x8xf32>
    %248 = tpu.matmul %246, %247, %cst_98 {dimension_numbers = #tpu.dot_dimension_numbers<[1], [1], [0], [0], [0, 0, 1, 0], [], []>} : vector<8x64xbf16>, vector<8x64xbf16>, vector<8x8xf32> -> vector<8x8xf32>
    %cst_99 = arith.constant 1.250000e-01 : f32
    %249 = vector.broadcast %cst_99 : f32 to vector<8x8xf32>
    %250 = arith.mulf %248, %249 : vector<8x8xf32>
    %251 = vector.broadcast %242 : vector<1x8xf32> to vector<8x8xf32>
    %252 = arith.addf %250, %251 : vector<8x8xf32>
    %cst_100 = arith.constant dense<0xFF800000> : vector<8xf32>
    %253 = vector.multi_reduction <maximumf>, %252, %cst_100 [1] : vector<8x8xf32> to vector<8xf32>
    %254 = vector.shape_cast %253 : vector<8xf32> to vector<8x1xf32>
    %255 = vector.broadcast %254 : vector<8x1xf32> to vector<8x8xf32>
    %256 = arith.subf %252, %255 : vector<8x8xf32>
    %257 = math.exp %256 : vector<8x8xf32>
    %cst_101 = arith.constant dense<0.000000e+00> : vector<8xf32>
    %258 = vector.multi_reduction <add>, %257, %cst_101 [1] : vector<8x8xf32> to vector<8xf32>
    %259 = vector.shape_cast %258 : vector<8xf32> to vector<8x1xf32>
    %260 = tpu.reciprocal %259 {approx = true} : vector<8x1xf32> -> vector<8x1xf32>
    %261 = vector.broadcast %260 : vector<8x1xf32> to vector<8x8xf32>
    %262 = arith.mulf %257, %261 : vector<8x8xf32>
    %263 = arith.truncf %262 : vector<8x8xf32> to vector<8x8xbf16>
    %264 = arith.truncf %245 : vector<8x64xf32> to vector<8x64xbf16>
    %cst_102 = arith.constant dense<0.000000e+00> : vector<8x64xf32>
    %265 = tpu.matmul %263, %264, %cst_102 {dimension_numbers = #tpu.dot_dimension_numbers<[1], [0], [0], [1], [0, 0, 1, 1], [], []>} : vector<8x8xbf16>, vector<8x64xbf16>, vector<8x64xf32> -> vector<8x64xf32>
    %266 = vector.extract_strided_slice %236 {offsets = [0, 64], sizes = [8, 64], strides = [1, 1]} : vector<8x384xf32> to vector<8x64xf32>
    %267 = vector.extract_strided_slice %236 {offsets = [0, 192], sizes = [8, 64], strides = [1, 1]} : vector<8x384xf32> to vector<8x64xf32>
    %268 = vector.extract_strided_slice %236 {offsets = [0, 320], sizes = [8, 64], strides = [1, 1]} : vector<8x384xf32> to vector<8x64xf32>
    %269 = arith.truncf %266 : vector<8x64xf32> to vector<8x64xbf16>
    %270 = arith.truncf %267 : vector<8x64xf32> to vector<8x64xbf16>
    %cst_103 = arith.constant dense<0.000000e+00> : vector<8x8xf32>
    %271 = tpu.matmul %269, %270, %cst_103 {dimension_numbers = #tpu.dot_dimension_numbers<[1], [1], [0], [0], [0, 0, 1, 0], [], []>} : vector<8x64xbf16>, vector<8x64xbf16>, vector<8x8xf32> -> vector<8x8xf32>
    %cst_104 = arith.constant 1.250000e-01 : f32
    %272 = vector.broadcast %cst_104 : f32 to vector<8x8xf32>
    %273 = arith.mulf %271, %272 : vector<8x8xf32>
    %274 = vector.broadcast %242 : vector<1x8xf32> to vector<8x8xf32>
    %275 = arith.addf %273, %274 : vector<8x8xf32>
    %cst_105 = arith.constant dense<0xFF800000> : vector<8xf32>
    %276 = vector.multi_reduction <maximumf>, %275, %cst_105 [1] : vector<8x8xf32> to vector<8xf32>
    %277 = vector.shape_cast %276 : vector<8xf32> to vector<8x1xf32>
    %278 = vector.broadcast %277 : vector<8x1xf32> to vector<8x8xf32>
    %279 = arith.subf %275, %278 : vector<8x8xf32>
    %280 = math.exp %279 : vector<8x8xf32>
    %cst_106 = arith.constant dense<0.000000e+00> : vector<8xf32>
    %281 = vector.multi_reduction <add>, %280, %cst_106 [1] : vector<8x8xf32> to vector<8xf32>
    %282 = vector.shape_cast %281 : vector<8xf32> to vector<8x1xf32>
    %283 = tpu.reciprocal %282 {approx = true} : vector<8x1xf32> -> vector<8x1xf32>
    %284 = vector.broadcast %283 : vector<8x1xf32> to vector<8x8xf32>
    %285 = arith.mulf %280, %284 : vector<8x8xf32>
    %286 = arith.truncf %285 : vector<8x8xf32> to vector<8x8xbf16>
    %287 = arith.truncf %268 : vector<8x64xf32> to vector<8x64xbf16>
    %cst_107 = arith.constant dense<0.000000e+00> : vector<8x64xf32>
    %288 = tpu.matmul %286, %287, %cst_107 {dimension_numbers = #tpu.dot_dimension_numbers<[1], [0], [0], [1], [0, 0, 1, 1], [], []>} : vector<8x8xbf16>, vector<8x64xbf16>, vector<8x64xf32> -> vector<8x64xf32>
    %289 = tpu.concatenate %265, %288 in 1 : vector<8x64xf32>, vector<8x64xf32> -> vector<8x128xf32>
    %290 = vector.extract_strided_slice %235 {offsets = [8, 0], sizes = [8, 384], strides = [1, 1]} : vector<16x384xf32> to vector<8x384xf32>
    %c1_108 = arith.constant 1 : index
    %291 = memref.load %arg1[%c1_108] : memref<2xi32, #tpu.memory_space<smem>>
    %292 = vector.broadcast %291 : i32 to vector<1x8xi32>
    %293 = arith.cmpi slt, %23, %292 : vector<1x8xi32>
    %cst_109 = arith.constant 0.000000e+00 : f32
    %cst_110 = arith.constant -1.000000e+09 : f32
    %294 = vector.broadcast %cst_109 : f32 to vector<1x8xf32>
    %295 = vector.broadcast %cst_110 : f32 to vector<1x8xf32>
    %296 = arith.select %293, %294, %295 : vector<1x8xi1>, vector<1x8xf32>
    %297 = vector.extract_strided_slice %290 {offsets = [0, 0], sizes = [8, 64], strides = [1, 1]} : vector<8x384xf32> to vector<8x64xf32>
    %298 = vector.extract_strided_slice %290 {offsets = [0, 128], sizes = [8, 64], strides = [1, 1]} : vector<8x384xf32> to vector<8x64xf32>
    %299 = vector.extract_strided_slice %290 {offsets = [0, 256], sizes = [8, 64], strides = [1, 1]} : vector<8x384xf32> to vector<8x64xf32>
    %300 = arith.truncf %297 : vector<8x64xf32> to vector<8x64xbf16>
    %301 = arith.truncf %298 : vector<8x64xf32> to vector<8x64xbf16>
    %cst_111 = arith.constant dense<0.000000e+00> : vector<8x8xf32>
    %302 = tpu.matmul %300, %301, %cst_111 {dimension_numbers = #tpu.dot_dimension_numbers<[1], [1], [0], [0], [0, 0, 1, 0], [], []>} : vector<8x64xbf16>, vector<8x64xbf16>, vector<8x8xf32> -> vector<8x8xf32>
    %cst_112 = arith.constant 1.250000e-01 : f32
    %303 = vector.broadcast %cst_112 : f32 to vector<8x8xf32>
    %304 = arith.mulf %302, %303 : vector<8x8xf32>
    %305 = vector.broadcast %296 : vector<1x8xf32> to vector<8x8xf32>
    %306 = arith.addf %304, %305 : vector<8x8xf32>
    %cst_113 = arith.constant dense<0xFF800000> : vector<8xf32>
    %307 = vector.multi_reduction <maximumf>, %306, %cst_113 [1] : vector<8x8xf32> to vector<8xf32>
    %308 = vector.shape_cast %307 : vector<8xf32> to vector<8x1xf32>
    %309 = vector.broadcast %308 : vector<8x1xf32> to vector<8x8xf32>
    %310 = arith.subf %306, %309 : vector<8x8xf32>
    %311 = math.exp %310 : vector<8x8xf32>
    %cst_114 = arith.constant dense<0.000000e+00> : vector<8xf32>
    %312 = vector.multi_reduction <add>, %311, %cst_114 [1] : vector<8x8xf32> to vector<8xf32>
    %313 = vector.shape_cast %312 : vector<8xf32> to vector<8x1xf32>
    %314 = tpu.reciprocal %313 {approx = true} : vector<8x1xf32> -> vector<8x1xf32>
    %315 = vector.broadcast %314 : vector<8x1xf32> to vector<8x8xf32>
    %316 = arith.mulf %311, %315 : vector<8x8xf32>
    %317 = arith.truncf %316 : vector<8x8xf32> to vector<8x8xbf16>
    %318 = arith.truncf %299 : vector<8x64xf32> to vector<8x64xbf16>
    %cst_115 = arith.constant dense<0.000000e+00> : vector<8x64xf32>
    %319 = tpu.matmul %317, %318, %cst_115 {dimension_numbers = #tpu.dot_dimension_numbers<[1], [0], [0], [1], [0, 0, 1, 1], [], []>} : vector<8x8xbf16>, vector<8x64xbf16>, vector<8x64xf32> -> vector<8x64xf32>
    %320 = vector.extract_strided_slice %290 {offsets = [0, 64], sizes = [8, 64], strides = [1, 1]} : vector<8x384xf32> to vector<8x64xf32>
    %321 = vector.extract_strided_slice %290 {offsets = [0, 192], sizes = [8, 64], strides = [1, 1]} : vector<8x384xf32> to vector<8x64xf32>
    %322 = vector.extract_strided_slice %290 {offsets = [0, 320], sizes = [8, 64], strides = [1, 1]} : vector<8x384xf32> to vector<8x64xf32>
    %323 = arith.truncf %320 : vector<8x64xf32> to vector<8x64xbf16>
    %324 = arith.truncf %321 : vector<8x64xf32> to vector<8x64xbf16>
    %cst_116 = arith.constant dense<0.000000e+00> : vector<8x8xf32>
    %325 = tpu.matmul %323, %324, %cst_116 {dimension_numbers = #tpu.dot_dimension_numbers<[1], [1], [0], [0], [0, 0, 1, 0], [], []>} : vector<8x64xbf16>, vector<8x64xbf16>, vector<8x8xf32> -> vector<8x8xf32>
    %cst_117 = arith.constant 1.250000e-01 : f32
    %326 = vector.broadcast %cst_117 : f32 to vector<8x8xf32>
    %327 = arith.mulf %325, %326 : vector<8x8xf32>
    %328 = vector.broadcast %296 : vector<1x8xf32> to vector<8x8xf32>
    %329 = arith.addf %327, %328 : vector<8x8xf32>
    %cst_118 = arith.constant dense<0xFF800000> : vector<8xf32>
    %330 = vector.multi_reduction <maximumf>, %329, %cst_118 [1] : vector<8x8xf32> to vector<8xf32>
    %331 = vector.shape_cast %330 : vector<8xf32> to vector<8x1xf32>
    %332 = vector.broadcast %331 : vector<8x1xf32> to vector<8x8xf32>
    %333 = arith.subf %329, %332 : vector<8x8xf32>
    %334 = math.exp %333 : vector<8x8xf32>
    %cst_119 = arith.constant dense<0.000000e+00> : vector<8xf32>
    %335 = vector.multi_reduction <add>, %334, %cst_119 [1] : vector<8x8xf32> to vector<8xf32>
    %336 = vector.shape_cast %335 : vector<8xf32> to vector<8x1xf32>
    %337 = tpu.reciprocal %336 {approx = true} : vector<8x1xf32> -> vector<8x1xf32>
    %338 = vector.broadcast %337 : vector<8x1xf32> to vector<8x8xf32>
    %339 = arith.mulf %334, %338 : vector<8x8xf32>
    %340 = arith.truncf %339 : vector<8x8xf32> to vector<8x8xbf16>
    %341 = arith.truncf %322 : vector<8x64xf32> to vector<8x64xbf16>
    %cst_120 = arith.constant dense<0.000000e+00> : vector<8x64xf32>
    %342 = tpu.matmul %340, %341, %cst_120 {dimension_numbers = #tpu.dot_dimension_numbers<[1], [0], [0], [1], [0, 0, 1, 1], [], []>} : vector<8x8xbf16>, vector<8x64xbf16>, vector<8x64xf32> -> vector<8x64xf32>
    %343 = tpu.concatenate %319, %342 in 1 : vector<8x64xf32>, vector<8x64xf32> -> vector<8x128xf32>
    %344 = tpu.concatenate %289, %343 in 0 : vector<8x128xf32>, vector<8x128xf32> -> vector<16x128xf32>
    %c1_121 = arith.constant 1 : index
    %c0_122 = arith.constant 0 : index
    %c0_123 = arith.constant 0 : index
    %345 = vector.load %arg7[%c1_121, %c0_122, %c0_123] : memref<2x128x128xbf16, #tpu.memory_space<vmem>>, vector<1x128x128xbf16>
    %346 = vector.shape_cast %345 : vector<1x128x128xbf16> to vector<128x128xbf16>
    %347 = arith.truncf %344 : vector<16x128xf32> to vector<16x128xbf16>
    %cst_124 = arith.constant dense<0.000000e+00> : vector<16x128xf32>
    %348 = tpu.matmul %347, %346, %cst_124 {dimension_numbers = #tpu.dot_dimension_numbers<[1], [0], [0], [1], [0, 0, 1, 1], [], []>} : vector<16x128xbf16>, vector<128x128xbf16>, vector<16x128xf32> -> vector<16x128xf32>
    %c1_125 = arith.constant 1 : index
    %c0_126 = arith.constant 0 : index
    %c0_127 = arith.constant 0 : index
    %349 = vector.load %arg8[%c1_125, %c0_126, %c0_127] : memref<2x1x128xf32, #tpu.memory_space<vmem>>, vector<1x1x128xf32>
    %350 = vector.shape_cast %349 : vector<1x1x128xf32> to vector<1x128xf32>
    %351 = vector.broadcast %350 : vector<1x128xf32> to vector<16x128xf32>
    %352 = arith.addf %348, %351 : vector<16x128xf32>
    %353 = arith.addf %352, %227 : vector<16x128xf32>
    %c1_128 = arith.constant 1 : index
    %c0_129 = arith.constant 0 : index
    %c0_130 = arith.constant 0 : index
    %354 = vector.load %arg9[%c1_128, %c0_129, %c0_130] : memref<2x1x128xf32, #tpu.memory_space<vmem>>, vector<1x1x128xf32>
    %355 = vector.shape_cast %354 : vector<1x1x128xf32> to vector<1x128xf32>
    %c1_131 = arith.constant 1 : index
    %c0_132 = arith.constant 0 : index
    %c0_133 = arith.constant 0 : index
    %356 = vector.load %arg10[%c1_131, %c0_132, %c0_133] : memref<2x1x128xf32, #tpu.memory_space<vmem>>, vector<1x1x128xf32>
    %357 = vector.shape_cast %356 : vector<1x1x128xf32> to vector<1x128xf32>
    %cst_134 = arith.constant dense<0.000000e+00> : vector<16xf32>
    %358 = vector.multi_reduction <add>, %353, %cst_134 [1] : vector<16x128xf32> to vector<16xf32>
    %359 = vector.shape_cast %358 : vector<16xf32> to vector<16x1xf32>
    %cst_135 = arith.constant 1.280000e+02 : f32
    %360 = vector.broadcast %cst_135 : f32 to vector<16x1xf32>
    %361 = arith.divf %359, %360 : vector<16x1xf32>
    %362 = vector.broadcast %361 : vector<16x1xf32> to vector<16x128xf32>
    %363 = arith.subf %353, %362 : vector<16x128xf32>
    %364 = arith.mulf %363, %363 : vector<16x128xf32>
    %cst_136 = arith.constant dense<0.000000e+00> : vector<16xf32>
    %365 = vector.multi_reduction <add>, %364, %cst_136 [1] : vector<16x128xf32> to vector<16xf32>
    %366 = vector.shape_cast %365 : vector<16xf32> to vector<16x1xf32>
    %cst_137 = arith.constant 1.280000e+02 : f32
    %367 = vector.broadcast %cst_137 : f32 to vector<16x1xf32>
    %368 = arith.divf %366, %367 : vector<16x1xf32>
    %cst_138 = arith.constant 9.99999996E-13 : f32
    %369 = vector.broadcast %cst_138 : f32 to vector<16x1xf32>
    %370 = arith.addf %368, %369 : vector<16x1xf32>
    %371 = math.rsqrt %370 : vector<16x1xf32>
    %372 = vector.broadcast %371 : vector<16x1xf32> to vector<16x128xf32>
    %373 = arith.mulf %363, %372 : vector<16x128xf32>
    %374 = vector.broadcast %355 : vector<1x128xf32> to vector<16x128xf32>
    %375 = arith.mulf %373, %374 : vector<16x128xf32>
    %376 = vector.broadcast %357 : vector<1x128xf32> to vector<16x128xf32>
    %377 = arith.addf %375, %376 : vector<16x128xf32>
    %c1_139 = arith.constant 1 : index
    %c0_140 = arith.constant 0 : index
    %c0_141 = arith.constant 0 : index
    %378 = vector.load %arg11[%c1_139, %c0_140, %c0_141] : memref<2x128x256xbf16, #tpu.memory_space<vmem>>, vector<1x128x256xbf16>
    %379 = vector.shape_cast %378 : vector<1x128x256xbf16> to vector<128x256xbf16>
    %380 = arith.truncf %377 : vector<16x128xf32> to vector<16x128xbf16>
    %cst_142 = arith.constant dense<0.000000e+00> : vector<16x256xf32>
    %381 = tpu.matmul %380, %379, %cst_142 {dimension_numbers = #tpu.dot_dimension_numbers<[1], [0], [0], [1], [0, 0, 1, 1], [], []>} : vector<16x128xbf16>, vector<128x256xbf16>, vector<16x256xf32> -> vector<16x256xf32>
    %c1_143 = arith.constant 1 : index
    %c0_144 = arith.constant 0 : index
    %c0_145 = arith.constant 0 : index
    %382 = vector.load %arg12[%c1_143, %c0_144, %c0_145] : memref<2x1x256xf32, #tpu.memory_space<vmem>>, vector<1x1x256xf32>
    %383 = vector.shape_cast %382 : vector<1x1x256xf32> to vector<1x256xf32>
    %384 = vector.broadcast %383 : vector<1x256xf32> to vector<16x256xf32>
    %385 = arith.addf %381, %384 : vector<16x256xf32>
    %cst_146 = arith.constant 5.000000e-01 : f32
    %386 = vector.broadcast %cst_146 : f32 to vector<16x256xf32>
    %387 = arith.mulf %386, %385 : vector<16x256xf32>
    %cst_147 = arith.constant 4.471500e-02 : f32
    %388 = vector.broadcast %cst_147 : f32 to vector<16x256xf32>
    %389 = arith.mulf %388, %385 : vector<16x256xf32>
    %390 = arith.mulf %389, %385 : vector<16x256xf32>
    %391 = arith.mulf %390, %385 : vector<16x256xf32>
    %392 = arith.addf %385, %391 : vector<16x256xf32>
    %cst_148 = arith.constant 0.797884583 : f32
    %393 = vector.broadcast %cst_148 : f32 to vector<16x256xf32>
    %394 = arith.mulf %393, %392 : vector<16x256xf32>
    %395 = math.tanh %394 : vector<16x256xf32>
    %cst_149 = arith.constant 1.000000e+00 : f32
    %396 = vector.broadcast %cst_149 : f32 to vector<16x256xf32>
    %397 = arith.addf %396, %395 : vector<16x256xf32>
    %398 = arith.mulf %387, %397 : vector<16x256xf32>
    %c1_150 = arith.constant 1 : index
    %c0_151 = arith.constant 0 : index
    %c0_152 = arith.constant 0 : index
    %399 = vector.load %arg13[%c1_150, %c0_151, %c0_152] : memref<2x256x128xbf16, #tpu.memory_space<vmem>>, vector<1x256x128xbf16>
    %400 = vector.shape_cast %399 : vector<1x256x128xbf16> to vector<256x128xbf16>
    %401 = arith.truncf %398 : vector<16x256xf32> to vector<16x256xbf16>
    %cst_153 = arith.constant dense<0.000000e+00> : vector<16x128xf32>
    %402 = tpu.matmul %401, %400, %cst_153 {dimension_numbers = #tpu.dot_dimension_numbers<[1], [0], [0], [1], [0, 0, 1, 1], [], []>} : vector<16x256xbf16>, vector<256x128xbf16>, vector<16x128xf32> -> vector<16x128xf32>
    %c1_154 = arith.constant 1 : index
    %c0_155 = arith.constant 0 : index
    %c0_156 = arith.constant 0 : index
    %403 = vector.load %arg14[%c1_154, %c0_155, %c0_156] : memref<2x1x128xf32, #tpu.memory_space<vmem>>, vector<1x1x128xf32>
    %404 = vector.shape_cast %403 : vector<1x1x128xf32> to vector<1x128xf32>
    %405 = vector.broadcast %404 : vector<1x128xf32> to vector<16x128xf32>
    %406 = arith.addf %402, %405 : vector<16x128xf32>
    %407 = arith.addf %406, %377 : vector<16x128xf32>
    %c1_157 = arith.constant 1 : index
    %c0_158 = arith.constant 0 : index
    %c0_159 = arith.constant 0 : index
    %408 = vector.load %arg15[%c1_157, %c0_158, %c0_159] : memref<2x1x128xf32, #tpu.memory_space<vmem>>, vector<1x1x128xf32>
    %409 = vector.shape_cast %408 : vector<1x1x128xf32> to vector<1x128xf32>
    %c1_160 = arith.constant 1 : index
    %c0_161 = arith.constant 0 : index
    %c0_162 = arith.constant 0 : index
    %410 = vector.load %arg16[%c1_160, %c0_161, %c0_162] : memref<2x1x128xf32, #tpu.memory_space<vmem>>, vector<1x1x128xf32>
    %411 = vector.shape_cast %410 : vector<1x1x128xf32> to vector<1x128xf32>
    %cst_163 = arith.constant dense<0.000000e+00> : vector<16xf32>
    %412 = vector.multi_reduction <add>, %407, %cst_163 [1] : vector<16x128xf32> to vector<16xf32>
    %413 = vector.shape_cast %412 : vector<16xf32> to vector<16x1xf32>
    %cst_164 = arith.constant 1.280000e+02 : f32
    %414 = vector.broadcast %cst_164 : f32 to vector<16x1xf32>
    %415 = arith.divf %413, %414 : vector<16x1xf32>
    %416 = vector.broadcast %415 : vector<16x1xf32> to vector<16x128xf32>
    %417 = arith.subf %407, %416 : vector<16x128xf32>
    %418 = arith.mulf %417, %417 : vector<16x128xf32>
    %cst_165 = arith.constant dense<0.000000e+00> : vector<16xf32>
    %419 = vector.multi_reduction <add>, %418, %cst_165 [1] : vector<16x128xf32> to vector<16xf32>
    %420 = vector.shape_cast %419 : vector<16xf32> to vector<16x1xf32>
    %cst_166 = arith.constant 1.280000e+02 : f32
    %421 = vector.broadcast %cst_166 : f32 to vector<16x1xf32>
    %422 = arith.divf %420, %421 : vector<16x1xf32>
    %cst_167 = arith.constant 9.99999996E-13 : f32
    %423 = vector.broadcast %cst_167 : f32 to vector<16x1xf32>
    %424 = arith.addf %422, %423 : vector<16x1xf32>
    %425 = math.rsqrt %424 : vector<16x1xf32>
    %426 = vector.broadcast %425 : vector<16x1xf32> to vector<16x128xf32>
    %427 = arith.mulf %417, %426 : vector<16x128xf32>
    %428 = vector.broadcast %409 : vector<1x128xf32> to vector<16x128xf32>
    %429 = arith.mulf %427, %428 : vector<16x128xf32>
    %430 = vector.broadcast %411 : vector<1x128xf32> to vector<16x128xf32>
    %431 = arith.addf %429, %430 : vector<16x128xf32>
    %c0_168 = arith.constant 0 : index
    %432 = memref.load %arg1[%c0_168] : memref<2xi32, #tpu.memory_space<smem>>
    %c1_i32 = arith.constant 1 : i32
    %433 = arith.cmpi sgt, %432, %c1_i32 : i32
    %434 = arith.extui %433 : i1 to i32
    %435 = arith.sitofp %434 : i32 to f32
    %436 = vector.extract_strided_slice %431 {offsets = [0, 0], sizes = [1, 128], strides = [1, 1]} : vector<16x128xf32> to vector<1x128xf32>
    %437 = vector.broadcast %435 : f32 to vector<1x128xf32>
    %438 = arith.mulf %436, %437 : vector<1x128xf32>
    %c1_169 = arith.constant 1 : index
    %439 = memref.load %arg1[%c1_169] : memref<2xi32, #tpu.memory_space<smem>>
    %c1_i32_170 = arith.constant 1 : i32
    %440 = arith.cmpi sgt, %439, %c1_i32_170 : i32
    %441 = arith.extui %440 : i1 to i32
    %442 = arith.sitofp %441 : i32 to f32
    %443 = vector.extract_strided_slice %431 {offsets = [8, 0], sizes = [1, 128], strides = [1, 1]} : vector<16x128xf32> to vector<1x128xf32>
    %444 = vector.broadcast %442 : f32 to vector<1x128xf32>
    %445 = arith.mulf %443, %444 : vector<1x128xf32>
    %446 = tpu.concatenate %438, %445 in 0 : vector<1x128xf32>, vector<1x128xf32> -> vector<2x128xf32>
    %c0_171 = arith.constant 0 : index
    %c0_172 = arith.constant 0 : index
    %447 = vector.load %arg17[%c0_171, %c0_172] : memref<2x128xf32, #tpu.memory_space<vmem>>, vector<2x128xf32>
    tpu.vector_store %arg17[%c0_171, %c0_172], %446 {strides = array<i32>} : memref<2x128xf32, #tpu.memory_space<vmem>>, vector<2x128xf32>,
    return
  }
  func.func @transform_0(%arg0: i32, %arg1: memref<2xi32, #tpu.memory_space<smem>>) -> (i32, i32) {
    %c0_i32 = arith.constant 0 : i32
    %c0_i32_0 = arith.constant 0 : i32
    %c0_i32_1 = arith.constant 0 : i32
    return %c0_i32, %c0_i32_0 : i32, i32
  }
  func.func @transform_1(%arg0: i32, %arg1: memref<2xi32, #tpu.memory_space<smem>>) -> (i32, i32) {
    %c0_i32 = arith.constant 0 : i32
    %c0_i32_0 = arith.constant 0 : i32
    %c0_i32_1 = arith.constant 0 : i32
    return %c0_i32, %c0_i32_0 : i32, i32
  }
  func.func @transform_2(%arg0: i32, %arg1: memref<2xi32, #tpu.memory_space<smem>>) -> (i32, i32) {
    %c0_i32 = arith.constant 0 : i32
    %c0_i32_0 = arith.constant 0 : i32
    %c0_i32_1 = arith.constant 0 : i32
    return %c0_i32, %c0_i32_0 : i32, i32
  }
  func.func @transform_3(%arg0: i32, %arg1: memref<2xi32, #tpu.memory_space<smem>>) -> (i32, i32, i32) {
    %c0_i32 = arith.constant 0 : i32
    %c0_i32_0 = arith.constant 0 : i32
    %c0_i32_1 = arith.constant 0 : i32
    %c0_i32_2 = arith.constant 0 : i32
    return %c0_i32, %c0_i32_0, %c0_i32_1 : i32, i32, i32
  }
  func.func @transform_4(%arg0: i32, %arg1: memref<2xi32, #tpu.memory_space<smem>>) -> (i32, i32, i32) {
    %c0_i32 = arith.constant 0 : i32
    %c0_i32_0 = arith.constant 0 : i32
    %c0_i32_1 = arith.constant 0 : i32
    %c0_i32_2 = arith.constant 0 : i32
    return %c0_i32, %c0_i32_0, %c0_i32_1 : i32, i32, i32
  }
  func.func @transform_5(%arg0: i32, %arg1: memref<2xi32, #tpu.memory_space<smem>>) -> (i32, i32, i32) {
    %c0_i32 = arith.constant 0 : i32
    %c0_i32_0 = arith.constant 0 : i32
    %c0_i32_1 = arith.constant 0 : i32
    %c0_i32_2 = arith.constant 0 : i32
    return %c0_i32, %c0_i32_0, %c0_i32_1 : i32, i32, i32
  }
  func.func @transform_6(%arg0: i32, %arg1: memref<2xi32, #tpu.memory_space<smem>>) -> (i32, i32, i32) {
    %c0_i32 = arith.constant 0 : i32
    %c0_i32_0 = arith.constant 0 : i32
    %c0_i32_1 = arith.constant 0 : i32
    %c0_i32_2 = arith.constant 0 : i32
    return %c0_i32, %c0_i32_0, %c0_i32_1 : i32, i32, i32
  }
  func.func @transform_7(%arg0: i32, %arg1: memref<2xi32, #tpu.memory_space<smem>>) -> (i32, i32, i32) {
    %c0_i32 = arith.constant 0 : i32
    %c0_i32_0 = arith.constant 0 : i32
    %c0_i32_1 = arith.constant 0 : i32
    %c0_i32_2 = arith.constant 0 : i32
    return %c0_i32, %c0_i32_0, %c0_i32_1 : i32, i32, i32
  }
  func.func @transform_8(%arg0: i32, %arg1: memref<2xi32, #tpu.memory_space<smem>>) -> (i32, i32, i32) {
    %c0_i32 = arith.constant 0 : i32
    %c0_i32_0 = arith.constant 0 : i32
    %c0_i32_1 = arith.constant 0 : i32
    %c0_i32_2 = arith.constant 0 : i32
    return %c0_i32, %c0_i32_0, %c0_i32_1 : i32, i32, i32
  }
  func.func @transform_9(%arg0: i32, %arg1: memref<2xi32, #tpu.memory_space<smem>>) -> (i32, i32, i32) {
    %c0_i32 = arith.constant 0 : i32
    %c0_i32_0 = arith.constant 0 : i32
    %c0_i32_1 = arith.constant 0 : i32
    %c0_i32_2 = arith.constant 0 : i32
    return %c0_i32, %c0_i32_0, %c0_i32_1 : i32, i32, i32
  }
  func.func @transform_10(%arg0: i32, %arg1: memref<2xi32, #tpu.memory_space<smem>>) -> (i32, i32, i32) {
    %c0_i32 = arith.constant 0 : i32
    %c0_i32_0 = arith.constant 0 : i32
    %c0_i32_1 = arith.constant 0 : i32
    %c0_i32_2 = arith.constant 0 : i32
    return %c0_i32, %c0_i32_0, %c0_i32_1 : i32, i32, i32
  }
  func.func @transform_11(%arg0: i32, %arg1: memref<2xi32, #tpu.memory_space<smem>>) -> (i32, i32, i32) {
    %c0_i32 = arith.constant 0 : i32
    %c0_i32_0 = arith.constant 0 : i32
    %c0_i32_1 = arith.constant 0 : i32
    %c0_i32_2 = arith.constant 0 : i32
    return %c0_i32, %c0_i32_0, %c0_i32_1 : i32, i32, i32
  }
  func.func @transform_12(%arg0: i32, %arg1: memref<2xi32, #tpu.memory_space<smem>>) -> (i32, i32, i32) {
    %c0_i32 = arith.constant 0 : i32
    %c0_i32_0 = arith.constant 0 : i32
    %c0_i32_1 = arith.constant 0 : i32
    %c0_i32_2 = arith.constant 0 : i32
    return %c0_i32, %c0_i32_0, %c0_i32_1 : i32, i32, i32
  }
  func.func @transform_13(%arg0: i32, %arg1: memref<2xi32, #tpu.memory_space<smem>>) -> (i32, i32, i32) {
    %c0_i32 = arith.constant 0 : i32
    %c0_i32_0 = arith.constant 0 : i32
    %c0_i32_1 = arith.constant 0 : i32
    %c0_i32_2 = arith.constant 0 : i32
    return %c0_i32, %c0_i32_0, %c0_i32_1 : i32, i32, i32
  }
  func.func @transform_14(%arg0: i32, %arg1: memref<2xi32, #tpu.memory_space<smem>>) -> (i32, i32, i32) {
    %c0_i32 = arith.constant 0 : i32
    %c0_i32_0 = arith.constant 0 : i32
    %c0_i32_1 = arith.constant 0 : i32
    %c0_i32_2 = arith.constant 0 : i32
    return %c0_i32, %c0_i32_0, %c0_i32_1 : i32, i32, i32
  }
  func.func @transform_15(%arg0: i32, %arg1: memref<2xi32, #tpu.memory_space<smem>>) -> (i32, i32) {
    %c0_i32 = arith.constant 0 : i32
    %c0_i32_0 = arith.constant 0 : i32
    %c0_i32_1 = arith.constant 0 : i32
    return %c0_i32, %c0_i32_0 : i32, i32
  }
}

</mosaic_0001>

<bundles_post_ra>
// kernel: cxtebd_forward.1
= control target key start
LH: loop header
LB: loop body
LE: loop exit
PB: predicated region body
PF: predicated region fallthrough
CT: control target
= control target key end

     0   :  { %s4122_s0 = inlined_call_operand.vmem [shape: s32[2], index: 0, kind: input, shape index: {}]   ;;  %s4123_s1 = inlined_call_operand.vmem [shape: f32[16,128], index: 1, kind: input, shape index: {}]   ;;  %s4124_s2 = inlined_call_operand.vmem [shape: f32[1,128], index: 2, kind: input, shape index: {}]   ;;  %s4125_s3 = inlined_call_operand.vmem [shape: f32[1,128], index: 3, kind: input, shape index: {}]   ;;  %s4126_s4 = inlined_call_operand.hbm [shape: bf16[2,128,384], index: 4, kind: input, shape index: {}]   ;;  %s4127_s5 = inlined_call_operand.vmem [shape: f32[2,1,384], index: 5, kind: input, shape index: {}]   ;;  %s4128_s6 = inlined_call_operand.vmem [shape: bf16[2,128,128], index: 6, kind: input, shape index: {}]   ;;  %s4129_s7 = inlined_call_operand.vmem [shape: f32[2,1,128], index: 7, kind: input, shape index: {}]   ;;  %s4130_s8 = inlined_call_operand.vmem [shape: f32[2,1,128], index: 8, kind: input, shape index: {}]   ;;  %s4131_s9 = inlined_call_operand.vmem [shape: f32[2,1,128], index: 9, kind: input, shape index: {}]   ;;  %s4132_s10 = inlined_call_operand.hbm [shape: bf16[2,128,256], index: 10, kind: input, shape index: {}]   ;;  %s4133_s11 = inlined_call_operand.vmem [shape: f32[2,1,256], index: 11, kind: input, shape index: {}]   ;;  %s4134_s12 = inlined_call_operand.hbm [shape: bf16[2,256,128], index: 12, kind: input, shape index: {}]   ;;  %s4135_s13 = inlined_call_operand.vmem [shape: f32[2,1,128], index: 13, kind: input, shape index: {}]   ;;  %s4136_s14 = inlined_call_operand.vmem [shape: f32[2,1,128], index: 14, kind: input, shape index: {}]   ;;  %s4137_s15 = inlined_call_operand.vmem [shape: f32[2,1,128], index: 15, kind: input, shape index: {}]   ;;  %s4138_s16 = inlined_call_operand.hbm [shape: f32[2,128], index: 16, kind: output, shape index: {}]  }
   0x1   :  { %4140 = sst [smem:[#allocation15_spill]] %s4122_s0 }
   0x2   :  { %4141 = sst [smem:[#allocation16_spill]] %s4131_s9  ;;  %s4142_s23 = sld [smem:[#allocation15_spill]] }
   0x8   :  { %s21_s9 = sshll.u32 %s4142_s23, 4  ;;  %s22_s9 = int_to_ptr.vmem [resolvable:$true] %s21_s9 }
   0x9   :  { %s3490_s24 = scalar_lea.vmem %s22_s9, 16  ;;  %p3495_p1 = scmp.lt.s32.totalorder %s22_s9, %s22_s9 }
   0xa   :  { %p3491_p0 = scmp.ne.s32.totalorder %s22_s9, %s3490_s24  ;;  %p3496_p2 = scmp.lt.s32.totalorder %s3490_s24, %s3490_s24 }
   0xc   :  { %p3497_p3 = por %p3496_p2, %p3495_p1 }
   0xe   :  { %p3498_p4 = pnand %p3497_p3, %p3491_p0 }
  0x10   :  { %3501 = shalt.err (!%p3498_p4)  }
  0x11   :  { %s3598_s25 = smov [#allocation3]  }
  0x12   :  { %24 = dma.vmem_to_smem %s22_s9, 16, %s3598_s25, [#allocation2] }
  0x13   :  { %3590 = dma.done.wait [#allocation2], 16 }
  0x14   :  { %3591 = vsyncadd [#allocation2], 4294967280 }
  0x15   :  { %26 = sfence }
  0x16   :  { %27 = vsyncpa [#allocation5], 0 }
  0x17   :  { %28 = vsyncpa [#allocation8], 0 }
  0x18   :  { %29 = vsyncpa [#allocation6], 0  ;;  %s3599_s26 = smov [#allocation7]   ;;  %s3502_s30 = scalar_lea.hbm %s4132_s10, 4096 }
  0x19   :  { %s63_s27 = sshll.u32 %s3599_s26, 4  ;;  %p3503_p5 = scmp.ne.s32.totalorder %s4132_s10, %s3502_s30  ;;  %s64_s27 = int_to_ptr.vmem [resolvable:$true] %s63_s27 }
  0x1a   :  { %p3506_p6 = scmp.lt.u32.totalorder %s3502_s30, %s4132_s10 }
  0x1c   :  { %p3508_p7 = pnand %p3506_p6, %p3503_p5 }
  0x1e   :  { %3511 = shalt.err (!%p3508_p7)
}
  0x1f   :  { %s3512_s9 = scalar_lea.vmem %s64_s27, 4096  ;;  %p3517_p9 = scmp.lt.s32.totalorder %s64_s27, %s64_s27 }
  0x20   :  { %p3513_p8 = scmp.ne.s32.totalorder %s64_s27, %s3512_s9  ;;  %p3518_p10 = scmp.lt.s32.totalorder %s3512_s9, %s3512_s9 }
  0x22   :  { %p3519_p11 = por %p3518_p10, %p3517_p9 }
  0x24   :  { %p3520_p12 = pnand %p3519_p11, %p3513_p8 }
  0x26   :  { %3523 = shalt.err (!%p3520_p12)
}
  0x27   :  { %s3600_s20 = smov 128   ;;  %s3601_s21 = smov 8  }
  0x28   :  { %69 = dma.hbm_to_vmem [thread:$0]  %s4132_s10, 4096, %s64_s27, [#allocation8], %s3600_s20, %s3600_s20, %s3601_s21  }
  0x29   :  { %s3602_s24 = smov [#allocation4]   ;;  %s3524_s29 = scalar_lea.hbm %s4126_s4, 6144 }
  0x2a   :  { %s41_s25 = sshll.u32 %s3602_s24, 4  ;;  %p3525_p13 = scmp.ne.s32.totalorder %s4126_s4, %s3524_s29  ;;  %s42_s25 = int_to_ptr.vmem [resolvable:$true] %s41_s25 }
  0x2b   :  { %p3528_p0 = scmp.lt.u32.totalorder %s3524_s29, %s4126_s4 }
  0x2d   :  { %p3530_p1 = pnand %p3528_p0, %p3525_p13 }
  0x2f   :  { %3533 = shalt.err (!%p3530_p1)
}
  0x30   :  { %s3534_s19 = scalar_lea.vmem %s42_s25, 6144  ;;  %p3539_p3 = scmp.lt.s32.totalorder %s42_s25, %s42_s25 }
  0x31   :  { %p3535_p2 = scmp.ne.s32.totalorder %s42_s25, %s3534_s19  ;;  %p3540_p4 = scmp.lt.s32.totalorder %s3534_s19, %s3534_s19 }
  0x33   :  { %p3541_p5 = por %p3540_p4, %p3539_p3 }
  0x35   :  { %p3542_p6 = pnand %p3541_p5, %p3535_p2 }
  0x37   :  { %3545 = shalt.err (!%p3542_p6)
}
  0x38   :  { %s3603_s10 = smov 192   ;;  %s3604_s27 = smov 12  }
  0x39   :  { %47 = dma.hbm_to_vmem [thread:$0]  %s4126_s4, 6144, %s42_s25, [#allocation5], %s3603_s10, %s3603_s10, %s3604_s27  }
  0x3a   :  { %s3605_s21 = smov [#allocation9]   ;;  %s3546_s26 = scalar_lea.hbm %s4134_s12, 4096 }
  0x3b   :  { %s77_s22 = sshll.u32 %s3605_s21, 4  ;;  %p3547_p7 = scmp.ne.s32.totalorder %s4134_s12, %s3546_s26  ;;  %s78_s22 = int_to_ptr.vmem [resolvable:$true] %s77_s22 }
  0x3c   :  { %p3550_p8 = scmp.lt.u32.totalorder %s3546_s26, %s4134_s12 }
  0x3e   :  { %p3552_p9 = pnand %p3550_p8, %p3547_p7 }
  0x40   :  { %3555 = shalt.err (!%p3552_p9)
}
  0x41   :  { %s3556_s17 = scalar_lea.vmem %s78_s22, 4096  ;;  %p3561_p11 = scmp.lt.s32.totalorder %s78_s22, %s78_s22 }
  0x42   :  { %p3557_p10 = scmp.ne.s32.totalorder %s78_s22, %s3556_s17  ;;  %p3562_p12 = scmp.lt.s32.totalorder %s3556_s17, %s3556_s17 }
  0x44   :  { %p3563_p13 = por %p3562_p12, %p3561_p11 }
  0x46   :  { %p3564_p0 = pnand %p3563_p13, %p3557_p10 }
  0x48   :  { %3567 = shalt.err (!%p3564_p0)
}
  0x49   :  { %s3606_s4 = smov 64   ;;  %s3607_s25 = smov 4  }
  0x4a   :  { %83 = dma.hbm_to_vmem [thread:$0]  %s4134_s12, 4096, %s78_s22, [#allocation8], %s3606_s4, %s3606_s4, %s3607_s25  }
  0x4b   :  { %3592 = dma.done.wait [#allocation5], 6144  }
  0x4c   :  { %3593 = vsyncadd [#allocation5], 4294961152 }
  0x4d   :  { %3594 = dma.done.wait [#allocation8], 8192  }
  0x4e   :  { %3595 = vsyncadd [#allocation8], 4294959104  ;;  %v100_v0 = vld [vmem:[%s4123_s1] sm:$0xff]  ;;  %v101_v1 = vld [vmem:[%s4123_s1 + $0x8] sm:$0xff]  ;;  %v3608_v4 = vmov 0.0   ;;  %v3609_v30 = vmov 0   ;;  %v143_v53 = vlaneseq }
  0x4f   :  { %104 = vadd.xlane.f32.xlu0 %v100_v0  ;;  %v3262_v2 = vld [vmem:[#allocation4 + $0x4] ss:$12 sps:$4 sm:$0xff]   ;;  %v3264_v3 = vld [vmem:[#allocation4] ss:$12 sps:$4 sm:$0xff]   ;;  %3061 = vmatprep.subr.bf16.mxu1 %v3608_v4  ;;  %v3265_v5 = vld [vmem:[#allocation4 + $0x8] ss:$12 sps:$4 sm:$0xff]  }
  0x50   :  { %v3266_v6 = vld [vmem:[#allocation4 + $0x1c] ss:$12 sps:$4 sm:$0xff]   ;;  %323 = vmatprep.subr.bf16.mxu0 %v3262_v2  ;;  %3062 = vmatpush3.bf16.msra.mxu1 %v3265_v5  ;;  %v3268_v15 = vld [vmem:[#allocation4 + $0x18] ss:$12 sps:$4 sm:$0xff]   ;;  %v3269_v16 = vld [vmem:[#allocation4 + $0x20] ss:$12 sps:$4 sm:$0xff]  }
  0x51   :  { %324 = vmatpush1.bf16.msra.mxu0 %v3264_v3  ;;  %3063 = vmatprep.subr.bf16.mxu1 %v3608_v4  ;;  %v3270_v17 = vld [vmem:[#allocation4 + $0x34] ss:$12 sps:$4 sm:$0xff]   ;;  %v3272_v18 = vld [vmem:[#allocation4 + $0x30] ss:$12 sps:$4 sm:$0xff]   ;;  %v3273_v19 = vld [vmem:[#allocation4 + $0x38] ss:$12 sps:$4 sm:$0xff]  }
  0x52   :  { %325 = vmatprep.subr.bf16.mxu0 %v3266_v6  ;;  %v3274_v20 = vld [vmem:[#allocation4 + $0x4c] ss:$12 sps:$4 sm:$0xff]   ;;  %v3276_v21 = vld [vmem:[#allocation4 + $0x48] ss:$12 sps:$4 sm:$0xff]   ;;  %v3277_v22 = vld [vmem:[#allocation4 + $0x50] ss:$12 sps:$4 sm:$0xff]   ;;  %355 = vmatprep.mubr.bf16.mxu0 %v3609_v30 }
  0x53   :  { %106 = vadd.xlane.f32.xlu0 %v101_v1  ;;  %v3278_v23 = vld [vmem:[#allocation4 + $0x64] ss:$12 sps:$4 sm:$0xff]   ;;  %v3280_v24 = vld [vmem:[#allocation4 + $0x60] ss:$12 sps:$4 sm:$0xff]   ;;  %v3281_v25 = vld [vmem:[#allocation4 + $0x68] ss:$12 sps:$4 sm:$0xff]  }
  0x54   :  { %3064 = vmatpush3.bf16.msra.mxu1 %v3269_v16  ;;  %v3282_v26 = vld [vmem:[#allocation4 + $0x7c] ss:$12 sps:$4 sm:$0xff]   ;;  %v3284_v27 = vld [vmem:[#allocation4 + $0x78] ss:$12 sps:$4 sm:$0xff]   ;;  %v3285_v28 = vld [vmem:[#allocation4 + $0x80] ss:$12 sps:$4 sm:$0xff]  }
  0x55   :  { %326 = vmatpush1.bf16.msra.mxu0 %v3268_v15  ;;  %3065 = vmatprep.subr.bf16.mxu1 %v3608_v4  ;;  %v3286_v29 = vld [vmem:[#allocation4 + $0x94] ss:$12 sps:$4 sm:$0xff]   ;;  %vm3610_vm0 = vmmov 0   ;;  %v3288_v31 = vld [vmem:[#allocation4 + $0x90] ss:$12 sps:$4 sm:$0xff]   ;;  %v3784_v54 = vshrl.u32 %v143_v53, 7 }
  0x56   :  { %327 = vmatprep.subr.bf16.mxu0 %v3270_v17  ;;  %3077 = vmatprep.mubr.msk.bf16.mxu1 %vm3610_vm0, %v3608_v4  ;;  %v3289_v32 = vld [vmem:[#allocation4 + $0x98] ss:$12 sps:$4 sm:$0xff]   ;;  %v3292_v34 = vld [vmem:[#allocation4 + $0xa8] ss:$12 sps:$4 sm:$0xff]   ;;  %v3293_v35 = vld [vmem:[#allocation4 + $0xb0] ss:$12 sps:$4 sm:$0xff]  }
  0x57   :  { %v3290_v33 = vld [vmem:[#allocation4 + $0xac] ss:$12 sps:$4 sm:$0xff]   ;;  %v2766_v44 = vld [vmem:[%s4124_s2] ss:$0 sm:$0xff]  ;;  %v3787_v55 = vsub.s32 1, %v3784_v54  ;;  %v190_v57 = vsub.s32 2, %v3784_v54 }
  0x58   :  { %3066 = vmatpush3.bf16.msra.mxu1 %v3273_v19  ;;  %v2767_v48 = vld [vmem:[%s4125_s3] ss:$0 sm:$0xff]  ;;  %v3795_v59 = vsub.s32 0, %v3784_v54  ;;  %vm413_vm1 = vcmask 523264   ;;  %vm479_vm2 = vcmask 1043456   ;;  %s3817_s23 = sld [smem:[#allocation3 + $0x1]] }
  0x59   :  { %328 = vmatpush1.bf16.msra.mxu0 %v3272_v18  ;;  %3067 = vmatprep.subr.bf16.mxu1 %v3608_v4  ;;  %v178_v56 = vld [vmem:[%s4127_s5] sm:$0x7]  ;;  %s3822_s24 = sld [smem:[#allocation3]]  ;;  %vm462_vm5 = vcmask 64512   ;;  %s4143_s30 = sld [smem:[#allocation16_spill]]  ;;  %vm2747_vm6 = vcmask 1040384  }
  0x5a   :  { %329 = vmatprep.subr.bf16.mxu0 %v3274_v20  ;;  %v187_v58 = vrot.slane %v178_v56, %v3787_v55  ;;  %v191_v62 = vrot.slane %v178_v56, %v190_v57 }
  0x5c   :  { %3068 = vmatpush3.bf16.msra.mxu1 %v3277_v22 }
  0x5d   :  { %330 = vmatpush1.bf16.msra.mxu0 %v3276_v21  ;;  %3069 = vmatprep.subr.bf16.mxu1 %v3608_v4  ;;  %v144_v21 = vand.u32 127, %v143_v53 }
  0x5e   :  { %331 = vmatprep.subr.bf16.mxu0 %v3278_v23  ;;  %v644_v22 = vstv %s3817_s23  ;;  %v3611_v23 = vmov -1e+09   ;;  %p2739_p1 = scmp.gt.s32.totalorder %s3817_s23, 1  ;;  %s3612_s23 = smov [#allocation10]  }
  0x5f   :  { %vm645_vm3 = vcmp.lt.s32.totalorder %v144_v21, %v644_v22  ;;  %p2734_p2 = scmp.gt.s32.totalorder %s3822_s24, 1 }
  0x60   :  { %3070 = vmatpush3.bf16.msra.mxu1 %v3281_v25  ;;  %v408_v25 = vstv %s3822_s24  ;;  %s2756_s24 = sshll.u32 %s3612_s23, 4  ;;  %s2757_s24 = int_to_ptr.vmem [resolvable:$true] %s2756_s24 }
  0x61   :  { %332 = vmatpush1.bf16.msra.mxu0 %v3280_v24  ;;  %3071 = vmatprep.subr.bf16.mxu1 %v3608_v4  ;;  %v3820_v24 = vsel %vm645_vm3, 0.0, %v3611_v23  ;;  %vm409_vm4 = vcmp.lt.s32.totalorder %v144_v21, %v408_v25  ;;  %s2735_s22 = scalar_select %p2734_p2, 1, 0 }
  0x62   :  { %333 = vmatprep.subr.bf16.mxu0 %v3282_v26  ;;  %p3573_p4 = scmp.lt.s32.totalorder %s2757_s24, %s2757_s24 }
  0x63   :  { %s2736_s28 = scvt.s32.f32 %s2735_s22 }
  0x64   :  { %3072 = vmatpush3.bf16.msra.mxu1 %v3285_v28 }
  0x65   :  { %334 = vmatpush1.bf16.msra.mxu0 %v3284_v27  ;;  %3073 = vmatprep.subr.bf16.mxu1 %v3608_v4  ;;  %v3825_v27 = vsel %vm409_vm4, 0.0, %v3611_v23 }
  0x66   :  { %335 = vmatprep.subr.bf16.mxu0 %v3286_v29 }
  0x68   :  { %3074 = vmatpush3.bf16.msra.mxu1 %v3289_v32 }
  0x69   :  { %336 = vmatpush1.bf16.msra.mxu0 %v3288_v31  ;;  %3075 = vmatprep.subr.bf16.mxu1 %v3608_v4 }
  0x6a   :  { %337 = vmatprep.subr.bf16.mxu0 %v3290_v33 }
  0x6c   :  { %3076 = vmatpush3.bf16.msra.mxu1 %v3293_v35 }
  0x6d   :  { %338 = vmatpush1.bf16.msra.mxu0 %v3292_v34  ;;  %3081 = vmatprep.subr.bf16.mxu1 %v3608_v4 }
  0x6e   :  { %3105 = vmatprep.subr.bf16.mxu0 %v3608_v4 }
  0xdc   :  { %v105_v7 = vpop.xlane.xlu0 %104 }
  0xdd   :  { %v109_v8 = vmul.f32 0.0078125, %v105_v7 }
  0xdf   :  { %v3747_v9 = vsub.f32 %v100_v0, %v109_v8  ;;  %v183_v8 = vrot.slane %v178_v56, %v3795_v59 }
  0xe0   :  { %v107_v10 = vpop.xlane.xlu0 %106 }
  0xe1   :  { %v110_v11 = vmul.f32 0.0078125, %v107_v10  ;;  %v113_v12 = vmul.f32 %v3747_v9, %v3747_v9 }
  0xe3   :  { %v3751_v13 = vsub.f32 %v101_v1, %v110_v11  ;;  %115 = vadd.xlane.f32.xlu1 %v113_v12 }
  0xe5   :  { %v114_v14 = vmul.f32 %v3751_v13, %v3751_v13 }
  0xe7   :  { %117 = vadd.xlane.f32.xlu1 %v114_v14 }
 0x170   :  { %v116_v36 = vpop.xlane.xlu1 %115 }
 0x171   :  { %v119_v37 = vmul.f32 0.0078125, %v116_v36 }
 0x173   :  { %v121_v38 = vadd.f32 1e-12, %v119_v37 }
 0x174   :  { %v118_v39 = vpop.xlane.xlu1 %117 }
 0x175   :  { %3422 = vrsqrt.f32 %v121_v38  ;;  %v120_v40 = vmul.f32 0.0078125, %v118_v39 }
 0x177   :  { %v122_v41 = vadd.f32 1e-12, %v120_v40 }
 0x179   :  { %3424 = vrsqrt.f32 %v122_v41 }
 0x17f   :  { %v3423_v42 = vpop.eup %3422 }
 0x180   :  { %v125_v43 = vmul.f32 %v3423_v42, %v3747_v9 }
 0x182   :  { %v133_v47 = vmul.f32 %v2766_v44, %v125_v43 }
 0x183   :  { %v3425_v45 = vpop.eup %3424 }
 0x184   :  { %v126_v46 = vmul.f32 %v3425_v45, %v3751_v13  ;;  %v3774_v50 = vadd.f32 %v2767_v48, %v133_v47 }
 0x186   :  { %v134_v49 = vmul.f32 %v2766_v44, %v126_v46 }
 0x188   :  { %v3776_v51 = vadd.f32 %v2767_v48, %v134_v49 }
 0x18a   :  { %v177_v52 = vpack.c.bf16 %v3776_v51, %v3774_v50 }
 0x18c   :  { %356 = vmatmul.mubr.bf16.vlgmr.msra.gmra.mrb[0].mxu0 %v177_v52  ;;  %3078 = vmatmul.mubr.bf16.vlgmr.msra.gmra.mrb[0].mxu1 %v177_v52 }
 0x18d   :  { %3083 = vmatprep.mubr.msk.bf16.mxu1 %vm3610_vm0, %v3608_v4  ;;  %3107 = vmatprep.mubr.msk.bf16.mxu0 %vm3610_vm0, %v3608_v4 }
 0x25f   :  { %v357_v60 = vpop.f32.mrb[0].mxu0  ;;  %v400_v61 = vpop.f32.mrb[0].mxu1 }
 0x260   :  { %v359_v63 = vpop.f32.mrb[1].mxu0  ;;  %v3079_v0 = vpop.f32.mrb[1].mxu1  ;;  %v401_v11 = vadd.f32 %v400_v61, %v191_v62  ;;  %v358_v14 = vadd.f32 %v357_v60, %v183_v8 }
 0x261   :  { %v360_v1 = vadd.f32 %v359_v63, %v187_v58  ;;  %v361_v2 = vpop.f32.mrb[2].mxu0  ;;  %v403_v3 = vpop.f32.mrb[2].mxu1 }
 0x262   :  { %v3799_v5 = vadd.f32 %v403_v3, %v191_v62  ;;  %v363_v6 = vpop.f32.mrb[3].mxu0  ;;  %v3080_v7 = vpop.f32.mrb[3].mxu1  ;;  %v3805_v16 = vpack.c.bf16 %v401_v11, %v401_v11  ;;  %v362_v17 = vadd.f32 %v361_v2, %v183_v8  ;;  %v411_v18 = vpack.c.bf16 %v358_v14, %v358_v14 }
 0x263   :  { %v412_v9 = vpack.c.bf16 %v360_v1, %v360_v1  ;;  %v364_v10 = vadd.f32 %v363_v6, %v187_v58 }
 0x264   :  { %v481_v19 = vsel %vm479_vm2, %v3805_v16, 0  ;;  %v647_v20 = vpack.c.bf16 %v362_v17, %v362_v17 }
 0x265   :  { %v418_v12 = vsel %vm413_vm1, %v412_v9, 0  ;;  %v648_v13 = vpack.c.bf16 %v364_v10, %v364_v10 }
 0x266   :  { %3082 = vmatpush3.bf16.xpose.msra.mxu1 %v418_v12 }
 0x267   :  { %v653_v15 = vsel %vm413_vm1, %v648_v13, 0  ;;  %3087 = vmatprep.subr.bf16.mxu1 %v3608_v4 }
 0x268   :  { %3106 = vmatpush3.bf16.xpose.msra.mxu0 %v653_v15 }
 0x269   :  { %3117 = vmatprep.subr.bf16.mxu0 %v3608_v4 }
 0x26d   :  { %3084 = vmatmul.mubr.msk.bf16.vlgmr.msra.gmra.mrb[4].mxu1 %vm413_vm1, %v411_v18 }
 0x26e   :  { %3088 = vmatpush3.bf16.msra.mxu1 %v481_v19  ;;  %3089 = vmatprep.mubr.msk.bf16.mxu1 %vm3610_vm0, %v3608_v4 }
 0x26f   :  { %3108 = vmatmul.mubr.msk.bf16.vlgmr.msra.gmra.mrb[4].mxu0 %vm413_vm1, %v647_v20  ;;  %3093 = vmatprep.subr.bf16.mxu1 %v3608_v4 }
 0x270   :  { %3119 = vmatprep.mubr.msk.bf16.mxu0 %vm3610_vm0, %v3608_v4 }
 0x340   :  { %v454_v26 = vpop.f32.mrb[4].mxu1 }
 0x341   :  { %v460_v28 = vmul.f32 0.125, %v454_v26  ;;  %v3085_v29 = vpop.f32.mrb[5].mxu1 }
 0x342   :  { %v457_v31 = vpop.f32.mrb[6].mxu1  ;;  %v689_v32 = vpop.f32.mrb[4].mxu0 }
 0x343   :  { %v3086_v33 = vpop.f32.mrb[7].mxu1  ;;  %v3109_v34 = vpop.f32.mrb[5].mxu0  ;;  %v461_v35 = vadd.f32 %v460_v28, %v3825_v27  ;;  %v695_v44 = vmul.f32 0.125, %v689_v32 }
 0x344   :  { %v692_v36 = vpop.f32.mrb[6].mxu0 }
 0x345   :  { %v3110_v37 = vpop.f32.mrb[7].mxu0  ;;  %v463_v38 = vsel %vm462_vm5, %v461_v35, -inf  ;;  %v696_v45 = vadd.f32 %v695_v44, %v3820_v24 }
 0x346   :  { %464 = vmax.xlane.f32.xlu0 %v463_v38  ;;  %v709_v38 = vpack.c.bf16 %v3799_v5, %v3799_v5 }
 0x347   :  { %v697_v46 = vsel %vm462_vm5, %v696_v45, -inf }
 0x35c   :  { %527 = vrot.lane.b32.xlu0 %v412_v9, %s3606_s4 }
 0x3d3   :  { %v465_v39 = vpop.xlane.xlu0 %464 }
 0x3d4   :  { %v466_v40 = vsub.f32 %v461_v35, %v465_v39 }
 0x3d6   :  { %v467_v41 = vmul.f32 1.442695, %v466_v40 }
 0x3d7   :  { %v528_v58 = vpop.permute.xlu0 %527 }
 0x3d8   :  { %3426 = vpow2.f32 %v467_v41  ;;  %v533_v61 = vsel %vm413_vm1, %v528_v58, 0 }
 0x3e2   :  { %v3427_v42 = vpop.eup %3426 }
 0x3e3   :  { %v469_v43 = vsel %vm462_vm5, %v3427_v42, 0.0 }
 0x3e4   :  { %470 = vadd.xlane.f32.xlu1 %v469_v43 }
 0x3f5   :  { %524 = vrot.lane.b32.xlu1 %v411_v18, %s3606_s4 }
 0x3f9   :  { %760 = vrot.lane.b32.xlu1 %v648_v13, %s3606_s4 }
 0x3fd   :  { %757 = vrot.lane.b32.xlu1 %v647_v20, %s3606_s4 }
 0x421   :  { %698 = vmax.xlane.f32.xlu1 %v697_v46 }
 0x471   :  { %v471_v47 = vpop.xlane.xlu1 %470 }
 0x472   :  { %3428 = vrcp.f32 %v471_v47  ;;  %v714_v47 = vsel %vm479_vm2, %v709_v38, 0 }
 0x475   :  { %v525_v48 = vpop.permute.xlu1 %524 }
 0x479   :  { %v761_v49 = vpop.permute.xlu1 %760 }
 0x47a   :  { %v766_v52 = vsel %vm413_vm1, %v761_v49, 0 }
 0x47b   :  { %3118 = vmatpush3.bf16.xpose.msra.mxu0 %v766_v52 }
 0x47c   :  { %v3429_v53 = vpop.eup %3428  ;;  %3129 = vmatprep.subr.bf16.mxu0 %v3608_v4 }
 0x47d   :  { %v473_v56 = vmul.f32 %v3429_v53, %v3427_v42  ;;  %v758_v62 = vpop.permute.xlu1 %757 }
 0x47f   :  { %v474_v60 = vpack.c.bf16 %v473_v56, %v473_v56 }
 0x481   :  { %3090 = vmatmul.mubr.msk.bf16.vlgmr.msra.gmra.mrb[8].mxu1 %vm462_vm5, %v474_v60  ;;  %v3294_v60 = vld [vmem:[%s4128_s6] sm:$0xff]  }
 0x482   :  { %3094 = vmatpush3.bf16.xpose.msra.mxu1 %v533_v61  ;;  %3120 = vmatmul.mubr.msk.bf16.vlgmr.msra.gmra.mrb[8].mxu0 %vm413_vm1, %v758_v62  ;;  %v3295_v61 = vld [vmem:[%s4128_s6 + $0x8] sm:$0xff]   ;;  %v3296_v62 = vld [vmem:[%s4128_s6 + $0x10] sm:$0xff]  }
 0x483   :  { %3095 = vmatprep.mubr.msk.bf16.mxu1 %vm3610_vm0, %v3608_v4  ;;  %3099 = vmatprep.subr.bf16.mxu1 %v3608_v4 }
 0x484   :  { %3145 = vmatprep.mubr.msk.bf16.mxu0 %vm3610_vm0, %v3608_v4  ;;  %3130 = vmatpush3.bf16.msra.mxu0 %v3294_v60  ;;  %v3322_v60 = vld [vmem:[#allocation7 + $0x64] ss:$8 sps:$4 sm:$0xff]  }
 0x485   :  { %3131 = vmatprep.subr.bf16.mxu0 %v3608_v4 }
 0x488   :  { %3132 = vmatpush3.bf16.msra.mxu0 %v3295_v61  ;;  %v3320_v61 = vld [vmem:[#allocation7 + $0x60] ss:$8 sps:$4 sm:$0xff]  }
 0x489   :  { %3096 = vmatmul.mubr.msk.bf16.vlgmr.msra.gmra.mrb[12].mxu1 %vm413_vm1, %v525_v48  ;;  %3133 = vmatprep.subr.bf16.mxu0 %v3608_v4 }
 0x48a   :  { %3101 = vmatprep.mubr.msk.bf16.mxu1 %vm3610_vm0, %v3608_v4 }
 0x48c   :  { %3134 = vmatpush3.bf16.msra.mxu0 %v3296_v62  ;;  %v3325_v62 = vld [vmem:[#allocation7 + $0x74] ss:$8 sps:$4 sm:$0xff]  }
 0x48d   :  { %3135 = vmatprep.subr.bf16.mxu0 %v3608_v4 }
 0x4ae   :  { %v699_v63 = vpop.xlane.xlu1 %698 }
 0x4af   :  { %v700_v0 = vsub.f32 %v696_v45, %v699_v63  ;;  %v3297_v63 = vld [vmem:[%s4128_s6 + $0x18] sm:$0xff]  }
 0x4b0   :  { %3136 = vmatpush3.bf16.msra.mxu0 %v3297_v63  ;;  %v3323_v63 = vld [vmem:[#allocation7 + $0x70] ss:$8 sps:$4 sm:$0xff]  }
 0x4b1   :  { %v701_v10 = vmul.f32 1.442695, %v700_v0  ;;  %v3298_v0 = vld [vmem:[%s4128_s6 + $0x20] sm:$0xff]   ;;  %3137 = vmatprep.subr.bf16.mxu0 %v3608_v4 }
 0x4b3   :  { %3430 = vpow2.f32 %v701_v10  ;;  %v3301_v10 = vld [vmem:[%s4128_s6 + $0x38] sm:$0xff]  }
 0x4b4   :  { %3138 = vmatpush3.bf16.msra.mxu0 %v3298_v0 }
 0x4b5   :  { %3139 = vmatprep.subr.bf16.mxu0 %v3608_v4 }
 0x4bd   :  { %v3431_v23 = vpop.eup %3430 }
 0x4be   :  { %v703_v25 = vsel %vm462_vm5, %v3431_v23, 0.0 }
 0x554   :  { %v3849_v1 = vpop.f32.mrb[8].mxu1 }
 0x555   :  { %v3091_v2 = vpop.f32.mrb[9].mxu1  ;;  %v802_v3 = vpop.f32.mrb[8].mxu0 }
 0x556   :  { %v520_v6 = vpop.f32.mrb[10].mxu1  ;;  %v3121_v7 = vpop.f32.mrb[9].mxu0  ;;  %v808_v13 = vmul.f32 0.125, %v802_v3  ;;  %v3299_v2 = vld [vmem:[%s4128_s6 + $0x28] sm:$0xff]   ;;  %v3300_v3 = vld [vmem:[%s4128_s6 + $0x30] sm:$0xff]  }
 0x557   :  { %v3092_v8 = vpop.f32.mrb[11].mxu1  ;;  %v805_v9 = vpop.f32.mrb[10].mxu0  ;;  %3140 = vmatpush3.bf16.msra.mxu0 %v3299_v2 }
 0x558   :  { %v3122_v11 = vpop.f32.mrb[11].mxu0  ;;  %v809_v21 = vadd.f32 %v808_v13, %v3820_v24  ;;  %3141 = vmatprep.subr.bf16.mxu0 %v3608_v4 }
 0x55a   :  { %v810_v22 = vsel %vm462_vm5, %v809_v21, -inf }
 0x55b   :  { %3142 = vmatpush3.bf16.msra.mxu0 %v3300_v3 }
 0x55c   :  { %v569_v12 = vpop.f32.mrb[12].mxu1  ;;  %3143 = vmatprep.subr.bf16.mxu0 %v3608_v4 }
 0x55d   :  { %v575_v14 = vmul.f32 0.125, %v569_v12  ;;  %v3097_v15 = vpop.f32.mrb[13].mxu1 }
 0x55e   :  { %v572_v17 = vpop.f32.mrb[14].mxu1 }
 0x55f   :  { %v3098_v18 = vpop.f32.mrb[15].mxu1  ;;  %v576_v19 = vadd.f32 %v575_v14, %v3825_v27  ;;  %3144 = vmatpush3.bf16.msra.mxu0 %v3301_v10 }
 0x561   :  { %v577_v20 = vsel %vm462_vm5, %v576_v19, -inf }
 0x562   :  { %578 = vmax.xlane.f32.xlu0 %v577_v20 }
 0x566   :  { %811 = vmax.xlane.f32.xlu0 %v810_v22 }
 0x56a   :  { %704 = vadd.xlane.f32.xlu0 %v703_v25 }
 0x5ef   :  { %v579_v26 = vpop.xlane.xlu0 %578 }
 0x5f0   :  { %v580_v28 = vsub.f32 %v576_v19, %v579_v26 }
 0x5f2   :  { %v581_v29 = vmul.f32 1.442695, %v580_v28 }
 0x5f3   :  { %v812_v31 = vpop.xlane.xlu0 %811 }
 0x5f4   :  { %3432 = vpow2.f32 %v581_v29  ;;  %v813_v32 = vsub.f32 %v809_v21, %v812_v31  ;;  %v2801_v29 = vld [vmem:[%s4129_s7] ss:$0 sm:$0xff] }
 0x5f6   :  { %v814_v33 = vmul.f32 1.442695, %v813_v32 }
 0x5f7   :  { %v705_v39 = vpop.xlane.xlu0 %704 }
 0x5f8   :  { %3434 = vpow2.f32 %v814_v33 }
 0x5fe   :  { %v3433_v34 = vpop.eup %3432 }
 0x5ff   :  { %v583_v35 = vsel %vm462_vm5, %v3433_v34, 0.0 }
 0x600   :  { %584 = vadd.xlane.f32.xlu0 %v583_v35 }
 0x602   :  { %v3435_v36 = vpop.eup %3434 }
 0x603   :  { %v816_v37 = vsel %vm462_vm5, %v3435_v36, 0.0 }
 0x604   :  { %817 = vadd.xlane.f32.xlu1 %v816_v37 }
 0x615   :  { %823 = vrot.lane.b32.xlu1 %v709_v38, %s3606_s4 }
 0x616   :  { %590 = vrot.lane.b32.xlu0 %v3805_v16, %s3606_s4 }
 0x68d   :  { %v585_v40 = vpop.xlane.xlu0 %584 }
 0x68e   :  { %3436 = vrcp.f32 %v585_v40  ;;  %v3307_v40 = vld [vmem:[#allocation7 + $0x14] ss:$8 sps:$4 sm:$0xff]  }
 0x68f   :  { %3438 = vrcp.f32 %v705_v39  ;;  %v3302_v39 = vld [vmem:[#allocation7] ss:$8 sps:$4 sm:$0xff]  }
 0x691   :  { %v591_v41 = vpop.permute.xlu0 %590  ;;  %v818_v43 = vpop.xlane.xlu1 %817 }
 0x692   :  { %v596_v42 = vsel %vm479_vm2, %v591_v41, 0  ;;  %3440 = vrcp.f32 %v818_v43  ;;  %v3305_v41 = vld [vmem:[#allocation7 + $0x10] ss:$8 sps:$4 sm:$0xff]  }
 0x693   :  { %3100 = vmatpush3.bf16.msra.mxu1 %v596_v42 }
 0x694   :  { %3111 = vmatprep.subr.bf16.mxu1 %v3608_v4 }
 0x695   :  { %v824_v48 = vpop.permute.xlu1 %823 }
 0x696   :  { %v829_v53 = vsel %vm479_vm2, %v824_v48, 0  ;;  %v3313_v48 = vld [vmem:[#allocation7 + $0x34] ss:$8 sps:$4 sm:$0xff]  }
 0x698   :  { %v3437_v44 = vpop.eup %3436 }
 0x699   :  { %v587_v45 = vmul.f32 %v3437_v44, %v3433_v34  ;;  %v3439_v46 = vpop.eup %3438 }
 0x69a   :  { %v707_v16 = vmul.f32 %v3439_v46, %v3431_v23 }
 0x69b   :  { %v588_v5 = vpack.c.bf16 %v587_v45, %v587_v45 }
 0x69c   :  { %v708_v49 = vpack.c.bf16 %v707_v16, %v707_v16  ;;  %v3441_v52 = vpop.eup %3440  ;;  %v3308_v16 = vld [vmem:[#allocation7 + $0x20] ss:$8 sps:$4 sm:$0xff]  }
 0x69d   :  { %3102 = vmatmul.mubr.msk.bf16.vlgmr.msra.gmra.mrb[16].mxu1 %vm462_vm5, %v588_v5  ;;  %v820_v56 = vmul.f32 %v3441_v52, %v3435_v36  ;;  %v3316_v52 = vld [vmem:[#allocation7 + $0x44] ss:$8 sps:$4 sm:$0xff]  }
 0x69e   :  { %3112 = vmatpush3.bf16.msra.mxu1 %v714_v47  ;;  %3113 = vmatprep.mubr.msk.bf16.mxu1 %vm3610_vm0, %v3608_v4 }
 0x69f   :  { %3123 = vmatprep.subr.bf16.mxu1 %v3608_v4  ;;  %v821_v58 = vpack.c.bf16 %v820_v56, %v820_v56  ;;  %v3319_v56 = vld [vmem:[#allocation7 + $0x54] ss:$8 sps:$4 sm:$0xff]  }
 0x6a5   :  { %3114 = vmatmul.mubr.msk.bf16.vlgmr.msra.gmra.mrb[20].mxu1 %vm462_vm5, %v708_v49  ;;  %v3311_v49 = vld [vmem:[#allocation7 + $0x30] ss:$8 sps:$4 sm:$0xff]  }
 0x6a6   :  { %3124 = vmatpush3.bf16.msra.mxu1 %v829_v53  ;;  %3125 = vmatprep.mubr.msk.bf16.mxu1 %vm3610_vm0, %v3608_v4  ;;  %v3314_v53 = vld [vmem:[#allocation7 + $0x40] ss:$8 sps:$4 sm:$0xff]  }
 0x6ad   :  { %3126 = vmatmul.mubr.msk.bf16.vlgmr.msra.gmra.mrb[24].mxu1 %vm462_vm5, %v821_v58  ;;  %v3317_v58 = vld [vmem:[#allocation7 + $0x50] ss:$8 sps:$4 sm:$0xff]  }
 0x6ae   :  { %1172 = vmatprep.mubr.bf16.mxu1 %v3609_v30 }
 0x770   :  { %v632_v6 = vpop.f32.mrb[16].mxu1 }
 0x771   :  { %v3103_v7 = vpop.f32.mrb[17].mxu1 }
 0x772   :  { %v635_v8 = vpop.f32.mrb[18].mxu1 }
 0x773   :  { %v3104_v9 = vpop.f32.mrb[19].mxu1 }
 0x778   :  { %v750_v11 = vpop.f32.mrb[20].mxu1 }
 0x779   :  { %v3115_v12 = vpop.f32.mrb[21].mxu1 }
 0x77a   :  { %v753_v13 = vpop.f32.mrb[22].mxu1 }
 0x77b   :  { %v3116_v14 = vpop.f32.mrb[23].mxu1 }
 0x780   :  { %v865_v15 = vpop.f32.mrb[24].mxu1 }
 0x781   :  { %v3252_v17 = vpack.i.bf16 %v865_v15, %v632_v6  ;;  %v3127_v18 = vpop.f32.mrb[25].mxu1  ;;  %v2811_v15 = vld [vmem:[%s4143_s30] ss:$0 sm:$0xff] }
 0x782   :  { %v868_v19 = vpop.f32.mrb[26].mxu1 }
 0x783   :  { %3253 = vrot.lane.b32.xlu1 %v3252_v17, %s3606_s4  ;;  %v3128_v20 = vpop.f32.mrb[27].mxu1 }
 0x7f5   :  { %v3254_v21 = vpop.permute.xlu1 %3253 }
 0x7f6   :  { %v3256_v22 = vunpack.i.h.bf16 %v3254_v21  ;;  %v3255_v23 = vunpack.i.l.bf16 %v3254_v21  ;;  %v3326_v21 = vld [vmem:[#allocation9 + $0x40] sm:$0xff]  }
 0x7f7   :  { %2983 = vmatprep.subr.bf16.mxu0 %v3326_v21 }
 0x7f8   :  { %v875_v25 = vsel %vm413_vm1, %v750_v11, %v3256_v22  ;;  %v642_v26 = vsel %vm413_vm1, %v3849_v1, %v3255_v23  ;;  %v3304_v1 = vld [vmem:[#allocation7 + $0x4] ss:$8 sps:$4 sm:$0xff]   ;;  %v2810_v11 = vld [vmem:[%s4130_s8] ss:$0 sm:$0xff] }
 0x7f9   :  { %v892_v28 = vpack.c.bf16 %v875_v25, %v642_v26  ;;  %1140 = vmatprep.subr.bf16.mxu1 %v3304_v1  ;;  %v3327_v22 = vld [vmem:[#allocation9] sm:$0xff]   ;;  %v3328_v23 = vld [vmem:[#allocation9 + $0x48] sm:$0xff]   ;;  %v3330_v26 = vld [vmem:[#allocation9 + $0x50] sm:$0xff]  }
 0x7fa   :  { %1141 = vmatpush1.bf16.msra.mxu1 %v3302_v39  ;;  %v3329_v25 = vld [vmem:[#allocation9 + $0x8] sm:$0xff]   ;;  %v3341_v39 = vld [vmem:[#allocation9 + $0x38] sm:$0xff]   ;;  %v1048_v1 = vld [vmem:[%s4133_s11] sm:$0x3] }
 0x7fb   :  { %3146 = vmatmul.mubr.bf16.vlgmr.msra.gmra.mrb[12].mxu0 %v892_v28  ;;  %1142 = vmatprep.subr.bf16.mxu1 %v3307_v40  ;;  %v3331_v28 = vld [vmem:[#allocation9 + $0x10] sm:$0xff]   ;;  %v1053_v40 = vrot.slane %v1048_v1, %v3795_v59 }
 0x7fc   :  { %2984 = vmatpush3.bf16.msra.mxu0 %v3327_v22 }
 0x7fd   :  { %2985 = vmatprep.subr.bf16.mxu0 %v3328_v23 }
 0x7fe   :  { %1143 = vmatpush1.bf16.msra.mxu1 %v3305_v41  ;;  %v1057_v41 = vrot.slane %v1048_v1, %v3787_v55 }
 0x800   :  { %2986 = vmatpush3.bf16.msra.mxu0 %v3329_v25 }
 0x801   :  { %2987 = vmatprep.subr.bf16.mxu0 %v3330_v26 }
 0x804   :  { %2988 = vmatpush3.bf16.msra.mxu0 %v3331_v28 }
 0x8ce   :  { %v982_v31 = vpop.f32.mrb[12].mxu0 }
 0x8cf   :  { %v983_v32 = vadd.f32 %v2801_v29, %v982_v31  ;;  %v3147_v33 = vpop.f32.mrb[13].mxu0  ;;  %v3333_v31 = vld [vmem:[#allocation9 + $0x18] sm:$0xff]  }
 0x8d0   :  { %v985_v34 = vpop.f32.mrb[14].mxu0  ;;  %v3335_v33 = vld [vmem:[#allocation9 + $0x20] sm:$0xff]  }
 0x8d1   :  { %v986_v35 = vadd.f32 %v2801_v29, %v985_v34  ;;  %v3148_v36 = vpop.f32.mrb[15].mxu0  ;;  %v989_v37 = vadd.f32 %v983_v32, %v3774_v50  ;;  %v3332_v29 = vld [vmem:[#allocation9 + $0x58] sm:$0xff]   ;;  %v3334_v32 = vld [vmem:[#allocation9 + $0x60] sm:$0xff]   ;;  %v3336_v34 = vld [vmem:[#allocation9 + $0x68] sm:$0xff]  }
 0x8d2   :  { %2989 = vmatprep.subr.bf16.mxu0 %v3332_v29  ;;  %v3338_v36 = vld [vmem:[#allocation9 + $0x70] sm:$0xff]  }
 0x8d3   :  { %993 = vadd.xlane.f32.xlu1 %v989_v37  ;;  %v990_v38 = vadd.f32 %v986_v35, %v3776_v51  ;;  %v3310_v51 = vld [vmem:[#allocation7 + $0x24] ss:$8 sps:$4 sm:$0xff]   ;;  %2990 = vmatpush3.bf16.msra.mxu0 %v3333_v31 }
 0x8d4   :  { %1144 = vmatprep.subr.bf16.mxu1 %v3310_v51  ;;  %2991 = vmatprep.subr.bf16.mxu0 %v3334_v32  ;;  %v3337_v35 = vld [vmem:[#allocation9 + $0x28] sm:$0xff]  }
 0x8d5   :  { %995 = vadd.xlane.f32.xlu0 %v990_v38  ;;  %1145 = vmatpush1.bf16.msra.mxu1 %v3308_v16 }
 0x8d6   :  { %1146 = vmatprep.subr.bf16.mxu1 %v3313_v48 }
 0x8d7   :  { %2992 = vmatpush3.bf16.msra.mxu0 %v3335_v33 }
 0x8d8   :  { %2993 = vmatprep.subr.bf16.mxu0 %v3336_v34 }
 0x8d9   :  { %1147 = vmatpush1.bf16.msra.mxu1 %v3311_v49 }
 0x8da   :  { %1148 = vmatprep.subr.bf16.mxu1 %v3316_v52 }
 0x8db   :  { %2994 = vmatpush3.bf16.msra.mxu0 %v3337_v35 }
 0x8dc   :  { %2995 = vmatprep.subr.bf16.mxu0 %v3338_v36  ;;  %v2828_v36 = vld [vmem:[%s4135_s13] ss:$0 sm:$0xff] }
 0x8dd   :  { %1149 = vmatpush1.bf16.msra.mxu1 %v3314_v53 }
 0x8de   :  { %1150 = vmatprep.subr.bf16.mxu1 %v3319_v56 }
 0x8e1   :  { %1151 = vmatpush1.bf16.msra.mxu1 %v3317_v58 }
 0x8e2   :  { %1152 = vmatprep.subr.bf16.mxu1 %v3322_v60 }
 0x8e5   :  { %1153 = vmatpush1.bf16.msra.mxu1 %v3320_v61 }
 0x8e6   :  { %1154 = vmatprep.subr.bf16.mxu1 %v3325_v62 }
 0x8e9   :  { %1155 = vmatpush1.bf16.msra.mxu1 %v3323_v63 }
 0x960   :  { %v994_v42 = vpop.xlane.xlu1 %993 }
 0x961   :  { %v997_v43 = vmul.f32 0.0078125, %v994_v42 }
 0x962   :  { %v996_v44 = vpop.xlane.xlu0 %995 }
 0x963   :  { %v999_v45 = vsub.f32 %v989_v37, %v997_v43  ;;  %v998_v5 = vmul.f32 0.0078125, %v996_v44  ;;  %v3339_v37 = vld [vmem:[#allocation9 + $0x30] sm:$0xff]  }
 0x964   :  { %2996 = vmatpush3.bf16.msra.mxu0 %v3339_v37 }
 0x965   :  { %v1000_v46 = vsub.f32 %v990_v38, %v998_v5  ;;  %v1001_v47 = vmul.f32 %v999_v45, %v999_v45  ;;  %v3340_v38 = vld [vmem:[#allocation9 + $0x78] sm:$0xff]  }
 0x966   :  { %2997 = vmatprep.subr.bf16.mxu0 %v3340_v38 }
 0x967   :  { %1003 = vadd.xlane.f32.xlu0 %v1001_v47  ;;  %v1002_v50 = vmul.f32 %v1000_v46, %v1000_v46 }
 0x968   :  { %2998 = vmatpush3.bf16.msra.mxu0 %v3341_v39 }
 0x969   :  { %3149 = vmatprep.subr.bf16.mxu0 %v3608_v4 }
 0x96b   :  { %1005 = vadd.xlane.f32.xlu0 %v1002_v50 }
 0x9f4   :  { %v1004_v0 = vpop.xlane.xlu0 %1003 }
 0x9f5   :  { %v1007_v2 = vmul.f32 0.0078125, %v1004_v0 }
 0x9f7   :  { %v1009_v3 = vadd.f32 1e-12, %v1007_v2 }
 0x9f8   :  { %v1006_v6 = vpop.xlane.xlu0 %1005 }
 0x9f9   :  { %3442 = vrsqrt.f32 %v1009_v3  ;;  %v1008_v7 = vmul.f32 0.0078125, %v1006_v6 }
 0x9fb   :  { %v1010_v8 = vadd.f32 1e-12, %v1008_v7 }
 0x9fd   :  { %3444 = vrsqrt.f32 %v1010_v8 }
 0xa03   :  { %v3443_v9 = vpop.eup %3442 }
 0xa04   :  { %v1013_v10 = vmul.f32 %v3443_v9, %v999_v45 }
 0xa06   :  { %v1021_v14 = vmul.f32 %v2810_v11, %v1013_v10 }
 0xa07   :  { %v3445_v12 = vpop.eup %3444 }
 0xa08   :  { %v1014_v13 = vmul.f32 %v3445_v12, %v1000_v46  ;;  %v3922_v18 = vadd.f32 %v2811_v15, %v1021_v14 }
 0xa0a   :  { %v1022_v17 = vmul.f32 %v2810_v11, %v1014_v13 }
 0xa0c   :  { %v3924_v19 = vadd.f32 %v2811_v15, %v1022_v17 }
 0xa0e   :  { %v1047_v20 = vpack.c.bf16 %v3924_v19, %v3922_v18 }
 0xa10   :  { %1173 = vmatmul.mubr.bf16.vlgmr.msra.gmra.mrb[28].mxu1 %v1047_v20 }
 0xa11   :  { %1651 = vmatprep.mubr.bf16.mxu1 %v3609_v30 }
 0xae3   :  { %v1174_v42 = vpop.f32.mrb[28].mxu1 }
 0xae4   :  { %v1175_v43 = vadd.f32 %v1174_v42, %v1053_v40  ;;  %v1176_v44 = vpop.f32.mrb[29].mxu1 }
 0xae5   :  { %v1177_v45 = vadd.f32 %v1176_v44, %v1057_v41  ;;  %v1178_v5 = vpop.f32.mrb[30].mxu1 }
 0xae6   :  { %v1187_v46 = vmul.f32 0.044715, %v1175_v43  ;;  %v1179_v47 = vadd.f32 %v1178_v5, %v1053_v40  ;;  %v1180_v50 = vpop.f32.mrb[31].mxu1  ;;  %v1183_v20 = vmul.f32 0.5, %v1175_v43  ;;  %v3344_v5 = vld [vmem:[#allocation4 + $0xc4] ss:$12 sps:$4 sm:$0xff]  }
 0xae7   :  { %v1188_v51 = vmul.f32 0.044715, %v1177_v45  ;;  %v1181_v16 = vadd.f32 %v1180_v50, %v1057_v41  ;;  %v1184_v23 = vmul.f32 0.5, %v1177_v45  ;;  %1619 = vmatprep.subr.bf16.mxu1 %v3344_v5  ;;  %v3349_v50 = vld [vmem:[#allocation4 + $0xe0] ss:$12 sps:$4 sm:$0xff]  }
 0xae8   :  { %v1191_v48 = vmul.f32 %v1187_v46, %v1175_v43  ;;  %v1189_v49 = vmul.f32 0.044715, %v1179_v47  ;;  %v1185_v21 = vmul.f32 0.5, %v1179_v47  ;;  %v3345_v46 = vld [vmem:[#allocation4 + $0xc8] ss:$12 sps:$4 sm:$0xff]  }
 0xae9   :  { %v1192_v52 = vmul.f32 %v1188_v51, %v1177_v45  ;;  %v1190_v53 = vmul.f32 0.044715, %v1181_v16  ;;  %v1186_v25 = vmul.f32 0.5, %v1181_v16  ;;  %v3346_v51 = vld [vmem:[#allocation4 + $0xd8] ss:$12 sps:$4 sm:$0xff]  }
 0xaea   :  { %v1195_v56 = vmul.f32 %v1191_v48, %v1175_v43  ;;  %v1193_v58 = vmul.f32 %v1189_v49, %v1179_v47 }
 0xaeb   :  { %v1196_v60 = vmul.f32 %v1192_v52, %v1177_v45  ;;  %v1194_v61 = vmul.f32 %v1190_v53, %v1181_v16 }
 0xaec   :  { %v1199_v62 = vadd.f32 %v1195_v56, %v1175_v43  ;;  %v1197_v63 = vmul.f32 %v1193_v58, %v1179_v47  ;;  %v3352_v58 = vld [vmem:[#allocation4 + $0xf4] ss:$12 sps:$4 sm:$0xff]  }
 0xaed   :  { %v1198_v0 = vmul.f32 %v1194_v61, %v1181_v16  ;;  %v1200_v2 = vadd.f32 %v1196_v60, %v1177_v45  ;;  %v3342_v45 = vld [vmem:[#allocation4 + $0xc0] ss:$12 sps:$4 sm:$0xff]   ;;  %v3350_v60 = vld [vmem:[#allocation4 + $0xf0] ss:$12 sps:$4 sm:$0xff]   ;;  %v3353_v61 = vld [vmem:[#allocation4 + $0xf8] ss:$12 sps:$4 sm:$0xff]  }
 0xaee   :  { %v1203_v3 = vmul.f32 0.7978846, %v1199_v62  ;;  %v1201_v6 = vadd.f32 %v1197_v63, %v1179_v47  ;;  %v3348_v47 = vld [vmem:[#allocation4 + $0xdc] ss:$12 sps:$4 sm:$0xff]   ;;  %1620 = vmatpush1.bf16.msra.mxu1 %v3342_v45  ;;  %v3356_v62 = vld [vmem:[#allocation4 + $0x10c] ss:$12 sps:$4 sm:$0xff]  }
 0xaef   :  { %v1202_v7 = vadd.f32 %v1198_v0, %v1181_v16  ;;  %v1204_v8 = vmul.f32 0.7978846, %v1200_v2  ;;  %1621 = vmatprep.subr.bf16.mxu1 %v3348_v47  ;;  %v3354_v63 = vld [vmem:[#allocation4 + $0x108] ss:$12 sps:$4 sm:$0xff]   ;;  %v3357_v0 = vld [vmem:[#allocation4 + $0x110] ss:$12 sps:$4 sm:$0xff]  }
 0xaf0   :  { %3446 = vtanh.f32 %v1203_v3  ;;  %v1205_v9 = vmul.f32 0.7978846, %v1201_v6  ;;  %v3360_v2 = vld [vmem:[#allocation4 + $0x124] ss:$12 sps:$4 sm:$0xff]   ;;  %v3358_v3 = vld [vmem:[#allocation4 + $0x120] ss:$12 sps:$4 sm:$0xff]  }
 0xaf1   :  { %v1206_v10 = vmul.f32 0.7978846, %v1202_v7  ;;  %3448 = vtanh.f32 %v1204_v8  ;;  %v3361_v6 = vld [vmem:[#allocation4 + $0x128] ss:$12 sps:$4 sm:$0xff]   ;;  %v3362_v8 = vld [vmem:[#allocation4 + $0x138] ss:$12 sps:$4 sm:$0xff]  }
 0xaf2   :  { %3450 = vtanh.f32 %v1205_v9  ;;  %1622 = vmatpush1.bf16.msra.mxu1 %v3346_v51  ;;  %v3364_v7 = vld [vmem:[#allocation4 + $0x13c] ss:$12 sps:$4 sm:$0xff]   ;;  %v3365_v9 = vld [vmem:[#allocation4 + $0x140] ss:$12 sps:$4 sm:$0xff]  }
 0xaf3   :  { %3452 = vtanh.f32 %v1206_v10  ;;  %1623 = vmatprep.subr.bf16.mxu1 %v3352_v58  ;;  %v3368_v10 = vld [vmem:[#allocation4 + $0x154] ss:$12 sps:$4 sm:$0xff]  }
 0xaf6   :  { %1624 = vmatpush1.bf16.msra.mxu1 %v3350_v60 }
 0xaf7   :  { %1625 = vmatprep.subr.bf16.mxu1 %v3356_v62 }
 0xafa   :  { %v3447_v11 = vpop.eup %3446  ;;  %1626 = vmatpush1.bf16.msra.mxu1 %v3354_v63 }
 0xafb   :  { %v3449_v12 = vpop.eup %3448  ;;  %v1211_v13 = vadd.f32 1.0, %v3447_v11  ;;  %1627 = vmatprep.subr.bf16.mxu1 %v3360_v2  ;;  %v3366_v11 = vld [vmem:[#allocation4 + $0x150] ss:$12 sps:$4 sm:$0xff]  }
 0xafc   :  { %v3451_v14 = vpop.eup %3450  ;;  %v1212_v15 = vadd.f32 1.0, %v3449_v12  ;;  %v3369_v12 = vld [vmem:[#allocation4 + $0x158] ss:$12 sps:$4 sm:$0xff]  }
 0xafd   :  { %v3453_v17 = vpop.eup %3452  ;;  %v1213_v22 = vadd.f32 1.0, %v3451_v14  ;;  %v1215_v28 = vmul.f32 %v1211_v13, %v1183_v20  ;;  %v3372_v13 = vld [vmem:[#allocation4 + $0x16c] ss:$12 sps:$4 sm:$0xff]   ;;  %v3370_v14 = vld [vmem:[#allocation4 + $0x168] ss:$12 sps:$4 sm:$0xff]  }
 0xafe   :  { %v1214_v26 = vadd.f32 1.0, %v3453_v17  ;;  %v1216_v31 = vmul.f32 %v1212_v15, %v1184_v23  ;;  %1628 = vmatpush1.bf16.msra.mxu1 %v3358_v3  ;;  %v3373_v15 = vld [vmem:[#allocation4 + $0x170] ss:$12 sps:$4 sm:$0xff]  }
 0xaff   :  { %v1217_v29 = vmul.f32 %v1213_v22, %v1185_v21  ;;  %1629 = vmatprep.subr.bf16.mxu1 %v3364_v7 }
 0xb00   :  { %v1218_v32 = vmul.f32 %v1214_v26, %v1186_v25 }
 0xb01   :  { %v1251_v33 = vpack.c.bf16 %v1217_v29, %v1215_v28  ;;  %v2845_v28 = vld [vmem:[%s4136_s14] ss:$0 sm:$0xff] }
 0xb02   :  { %v1252_v34 = vpack.c.bf16 %v1218_v32, %v1216_v31  ;;  %1630 = vmatpush1.bf16.msra.mxu1 %v3362_v8 }
 0xb03   :  { %1631 = vmatprep.subr.bf16.mxu1 %v3368_v10 }
 0xb04   :  { %1388 = vmatprep.mubr.bf16.mxu0 %v1252_v34  ;;  %v2846_v34 = vld [vmem:[%s4137_s15] ss:$0 sm:$0xff] }
 0xb05   :  { %1389 = vmatmul.mubr.bf16.vlgmr.msra.gmra.mrb[16].mxu0 %v1251_v33 }
 0xb06   :  { %3165 = vmatprep.mubr.msk.bf16.mxu0 %vm3610_vm0, %v3608_v4  ;;  %3150 = vmatpush3.bf16.msra.mxu0 %v3345_v46 }
 0xb07   :  { %3151 = vmatprep.subr.bf16.mxu0 %v3608_v4  ;;  %1632 = vmatpush1.bf16.msra.mxu1 %v3366_v11 }
 0xb08   :  { %1633 = vmatprep.subr.bf16.mxu1 %v3372_v13 }
 0xb0a   :  { %3152 = vmatpush3.bf16.msra.mxu0 %v3349_v50 }
 0xb0b   :  { %3153 = vmatprep.subr.bf16.mxu0 %v3608_v4  ;;  %1634 = vmatpush1.bf16.msra.mxu1 %v3370_v14 }
 0xb0c   :  { %3169 = vmatprep.subr.bf16.mxu1 %v3608_v4 }
 0xb0e   :  { %3154 = vmatpush3.bf16.msra.mxu0 %v3353_v61 }
 0xb0f   :  { %3155 = vmatprep.subr.bf16.mxu0 %v3608_v4 }
 0xb12   :  { %3156 = vmatpush3.bf16.msra.mxu0 %v3357_v0 }
 0xb13   :  { %3157 = vmatprep.subr.bf16.mxu0 %v3608_v4 }
 0xb16   :  { %3158 = vmatpush3.bf16.msra.mxu0 %v3361_v6 }
 0xb17   :  { %3159 = vmatprep.subr.bf16.mxu0 %v3608_v4 }
 0xb1a   :  { %3160 = vmatpush3.bf16.msra.mxu0 %v3365_v9 }
 0xb1b   :  { %3161 = vmatprep.subr.bf16.mxu0 %v3608_v4 }
 0xb1e   :  { %3162 = vmatpush3.bf16.msra.mxu0 %v3369_v12 }
 0xb1f   :  { %3163 = vmatprep.subr.bf16.mxu0 %v3608_v4 }
 0xb22   :  { %3164 = vmatpush3.bf16.msra.mxu0 %v3373_v15 }
 0xb23   :  { %3193 = vmatprep.subr.bf16.mxu0 %v3608_v4 }
 0xbd8   :  { %v2999_v35 = vpop.f32.mrb[16].mxu0 }
 0xbd9   :  { %v3000_v37 = vpop.f32.mrb[17].mxu0 }
 0xbda   :  { %v3001_v38 = vadd.f32 %v3000_v37, %v2999_v35  ;;  %v3002_v39 = vpop.f32.mrb[18].mxu0 }
 0xbdb   :  { %v3003_v1 = vpop.f32.mrb[19].mxu0 }
 0xbdc   :  { %v1391_v40 = vadd.f32 %v3001_v38, %v2828_v36  ;;  %v3004_v41 = vadd.f32 %v3003_v1, %v3002_v39  ;;  %v2847_v39 = vld [vmem:[%s4127_s5 + $0x3] sm:$0x7] }
 0xbdd   :  { %v1483_v1 = vrot.slane %v2847_v39, %v3787_v55 }
 0xbde   :  { %v1394_v42 = vadd.f32 %v3004_v41, %v2828_v36  ;;  %v1397_v43 = vadd.f32 %v1391_v40, %v3922_v18 }
 0xbe0   :  { %1401 = vadd.xlane.f32.xlu1 %v1397_v43  ;;  %v1398_v44 = vadd.f32 %v1394_v42, %v3924_v19  ;;  %v1487_v42 = vrot.slane %v2847_v39, %v190_v57 }
 0xbe2   :  { %1403 = vadd.xlane.f32.xlu0 %v1398_v44 }
 0xc6d   :  { %v1402_v18 = vpop.xlane.xlu1 %1401 }
 0xc6e   :  { %v1405_v16 = vmul.f32 0.0078125, %v1402_v18  ;;  %v1479_v18 = vrot.slane %v2847_v39, %v3795_v59 }
 0xc6f   :  { %v1404_v19 = vpop.xlane.xlu0 %1403 }
 0xc70   :  { %v1407_v48 = vsub.f32 %v1397_v43, %v1405_v16  ;;  %v1406_v49 = vmul.f32 0.0078125, %v1404_v19 }
 0xc72   :  { %v1408_v52 = vsub.f32 %v1398_v44, %v1406_v49  ;;  %v1409_v53 = vmul.f32 %v1407_v48, %v1407_v48 }
 0xc74   :  { %1411 = vadd.xlane.f32.xlu1 %v1409_v53  ;;  %v1410_v56 = vmul.f32 %v1408_v52, %v1408_v52 }
 0xc76   :  { %1413 = vadd.xlane.f32.xlu0 %v1410_v56 }
 0xd01   :  { %v1412_v17 = vpop.xlane.xlu1 %1411 }
 0xd02   :  { %v1415_v20 = vmul.f32 0.0078125, %v1412_v17 }
 0xd03   :  { %v1414_v21 = vpop.xlane.xlu0 %1413 }
 0xd04   :  { %v1417_v22 = vadd.f32 1e-12, %v1415_v20  ;;  %v1416_v23 = vmul.f32 0.0078125, %v1414_v21 }
 0xd06   :  { %3454 = vrsqrt.f32 %v1417_v22  ;;  %v1418_v25 = vadd.f32 1e-12, %v1416_v23 }
 0xd08   :  { %3456 = vrsqrt.f32 %v1418_v25 }
 0xd10   :  { %v3455_v26 = vpop.eup %3454 }
 0xd11   :  { %v1421_v29 = vmul.f32 %v3455_v26, %v1407_v48 }
 0xd12   :  { %v3457_v31 = vpop.eup %3456 }
 0xd13   :  { %v1422_v32 = vmul.f32 %v3457_v31, %v1408_v52  ;;  %v1429_v33 = vmul.f32 %v2845_v28, %v1421_v29 }
 0xd15   :  { %v1430_v35 = vmul.f32 %v2845_v28, %v1422_v32  ;;  %v3957_v36 = vadd.f32 %v2846_v34, %v1429_v33 }
 0xd17   :  { %v3959_v37 = vadd.f32 %v2846_v34, %v1430_v35 }
 0xd19   :  { %v1472_v38 = vpack.c.bf16 %v3959_v37, %v3957_v36 }
 0xd1b   :  { %1652 = vmatmul.mubr.bf16.vlgmr.msra.gmra.mrb[32].mxu1 %v1472_v38  ;;  %3166 = vmatmul.mubr.bf16.vlgmr.msra.gmra.mrb[20].mxu0 %v1472_v38 }
 0xd1c   :  { %3171 = vmatprep.mubr.msk.bf16.mxu1 %vm3610_vm0, %v3608_v4  ;;  %3195 = vmatprep.mubr.msk.bf16.mxu0 %vm3610_vm0, %v3608_v4 }
 0xdee   :  { %v1653_v40 = vpop.f32.mrb[32].mxu1  ;;  %v1696_v41 = vpop.f32.mrb[20].mxu0 }
 0xdef   :  { %v1655_v43 = vpop.f32.mrb[33].mxu1  ;;  %v3167_v44 = vpop.f32.mrb[21].mxu0  ;;  %v1697_v48 = vadd.f32 %v1696_v41, %v1487_v42  ;;  %v1654_v54 = vadd.f32 %v1653_v40, %v1479_v18 }
 0xdf0   :  { %v1656_v45 = vadd.f32 %v1655_v43, %v1483_v1  ;;  %v1657_v5 = vpop.f32.mrb[34].mxu1  ;;  %v1699_v46 = vpop.f32.mrb[22].mxu0 }
 0xdf1   :  { %v3973_v47 = vadd.f32 %v1699_v46, %v1487_v42  ;;  %v1659_v50 = vpop.f32.mrb[35].mxu1  ;;  %v3168_v51 = vpop.f32.mrb[23].mxu0  ;;  %v3979_v53 = vpack.c.bf16 %v1697_v48, %v1697_v48  ;;  %v1658_v56 = vadd.f32 %v1657_v5, %v1479_v18  ;;  %v1703_v58 = vpack.c.bf16 %v1654_v54, %v1654_v54 }
 0xdf2   :  { %v1704_v16 = vpack.c.bf16 %v1656_v45, %v1656_v45  ;;  %v1660_v19 = vadd.f32 %v1659_v50, %v1483_v1 }
 0xdf3   :  { %v1770_v60 = vsel %vm479_vm2, %v3979_v53, 0  ;;  %v1932_v61 = vpack.c.bf16 %v1658_v56, %v1658_v56 }
 0xdf4   :  { %v1709_v49 = vsel %vm413_vm1, %v1704_v16, 0  ;;  %v1933_v52 = vpack.c.bf16 %v1660_v19, %v1660_v19 }
 0xdf5   :  { %3170 = vmatpush3.bf16.xpose.msra.mxu1 %v1709_v49 }
 0xdf6   :  { %v1938_v57 = vsel %vm413_vm1, %v1933_v52, 0  ;;  %3175 = vmatprep.subr.bf16.mxu1 %v3608_v4 }
 0xdf7   :  { %3194 = vmatpush3.bf16.xpose.msra.mxu0 %v1938_v57 }
 0xdf8   :  { %3205 = vmatprep.subr.bf16.mxu0 %v3608_v4 }
 0xdfc   :  { %3172 = vmatmul.mubr.msk.bf16.vlgmr.msra.gmra.mrb[36].mxu1 %vm413_vm1, %v1703_v58 }
 0xdfd   :  { %3176 = vmatpush3.bf16.msra.mxu1 %v1770_v60  ;;  %3177 = vmatprep.mubr.msk.bf16.mxu1 %vm3610_vm0, %v3608_v4 }
 0xdfe   :  { %3196 = vmatmul.mubr.msk.bf16.vlgmr.msra.gmra.mrb[24].mxu0 %vm413_vm1, %v1932_v61  ;;  %3181 = vmatprep.subr.bf16.mxu1 %v3608_v4 }
 0xdff   :  { %3207 = vmatprep.mubr.msk.bf16.mxu0 %vm3610_vm0, %v3608_v4 }
 0xecf   :  { %v1745_v62 = vpop.f32.mrb[36].mxu1 }
 0xed0   :  { %v1751_v63 = vmul.f32 0.125, %v1745_v62  ;;  %v3173_v0 = vpop.f32.mrb[37].mxu1 }
 0xed1   :  { %v1748_v2 = vpop.f32.mrb[38].mxu1  ;;  %v1974_v3 = vpop.f32.mrb[24].mxu0 }
 0xed2   :  { %v3174_v6 = vpop.f32.mrb[39].mxu1  ;;  %v3197_v7 = vpop.f32.mrb[25].mxu0  ;;  %v1752_v8 = vadd.f32 %v1751_v63, %v3825_v27  ;;  %v1980_v25 = vmul.f32 0.125, %v1974_v3 }
 0xed3   :  { %v1977_v9 = vpop.f32.mrb[26].mxu0 }
 0xed4   :  { %v3198_v10 = vpop.f32.mrb[27].mxu0  ;;  %v1753_v11 = vsel %vm462_vm5, %v1752_v8, -inf  ;;  %v1981_v26 = vadd.f32 %v1980_v25, %v3820_v24  ;;  %v1994_v9 = vpack.c.bf16 %v3973_v47, %v3973_v47 }
 0xed5   :  { %1754 = vmax.xlane.f32.xlu1 %v1753_v11 }
 0xed6   :  { %v1982_v28 = vsel %vm462_vm5, %v1981_v26, -inf }
 0xee6   :  { %1816 = vrot.lane.b32.xlu1 %v1704_v16, %s3606_s4 }
 0xeea   :  { %2045 = vrot.lane.b32.xlu1 %v1933_v52, %s3606_s4 }
 0xeee   :  { %2042 = vrot.lane.b32.xlu1 %v1932_v61, %s3606_s4 }
 0xf62   :  { %v1755_v12 = vpop.xlane.xlu1 %1754 }
 0xf63   :  { %v1756_v13 = vsub.f32 %v1752_v8, %v1755_v12 }
 0xf65   :  { %v1757_v14 = vmul.f32 1.442695, %v1756_v13 }
 0xf66   :  { %v1817_v15 = vpop.permute.xlu1 %1816 }
 0xf67   :  { %3458 = vpow2.f32 %v1757_v14  ;;  %v1822_v34 = vsel %vm413_vm1, %v1817_v15, 0 }
 0xf6a   :  { %v2046_v17 = vpop.permute.xlu1 %2045 }
 0xf6b   :  { %v2051_v20 = vsel %vm413_vm1, %v2046_v17, 0  ;;  %v1999_v17 = vsel %vm479_vm2, %v1994_v9, 0 }
 0xf6c   :  { %3206 = vmatpush3.bf16.xpose.msra.mxu0 %v2051_v20 }
 0xf6d   :  { %3217 = vmatprep.subr.bf16.mxu0 %v3608_v4 }
 0xf6e   :  { %v2043_v22 = vpop.permute.xlu1 %2042 }
 0xf71   :  { %v3459_v21 = vpop.eup %3458 }
 0xf72   :  { %v1759_v23 = vsel %vm462_vm5, %v3459_v21, 0.0 }
 0xf73   :  { %1760 = vadd.xlane.f32.xlu0 %v1759_v23  ;;  %3208 = vmatmul.mubr.msk.bf16.vlgmr.msra.gmra.mrb[28].mxu0 %vm413_vm1, %v2043_v22 }
 0xf74   :  { %3233 = vmatprep.mubr.msk.bf16.mxu0 %vm3610_vm0, %v3608_v4 }
 0xf89   :  { %1813 = vrot.lane.b32.xlu0 %v1703_v58, %s3606_s4 }
 0xfa8   :  { %1983 = vmax.xlane.f32.xlu0 %v1982_v28  ;;  %v3374_v28 = vld [vmem:[%s4128_s6 + $0x40] sm:$0xff]  }
 0xfa9   :  { %3218 = vmatpush3.bf16.msra.mxu0 %v3374_v28 }
 0xfaa   :  { %3219 = vmatprep.subr.bf16.mxu0 %v3608_v4 }
0x1000   :  { %v1761_v29 = vpop.xlane.xlu0 %1760 }
0x1001   :  { %3460 = vrcp.f32 %v1761_v29  ;;  %v3375_v29 = vld [vmem:[%s4128_s6 + $0x48] sm:$0xff]  }
0x1002   :  { %3220 = vmatpush3.bf16.msra.mxu0 %v3375_v29 }
0x1003   :  { %3221 = vmatprep.subr.bf16.mxu0 %v3608_v4 }
0x1004   :  { %v1814_v35 = vpop.permute.xlu0 %1813 }
0x100b   :  { %v3461_v31 = vpop.eup %3460 }
0x100c   :  { %v1763_v32 = vmul.f32 %v3461_v31, %v3459_v21  ;;  %v3376_v31 = vld [vmem:[%s4128_s6 + $0x50] sm:$0xff]  }
0x100d   :  { %3222 = vmatpush3.bf16.msra.mxu0 %v3376_v31 }
0x100e   :  { %v1764_v33 = vpack.c.bf16 %v1763_v32, %v1763_v32  ;;  %3223 = vmatprep.subr.bf16.mxu0 %v3608_v4  ;;  %v3378_v32 = vld [vmem:[%s4128_s6 + $0x60] sm:$0xff]  }
0x1010   :  { %3178 = vmatmul.mubr.msk.bf16.vlgmr.msra.gmra.mrb[40].mxu1 %vm462_vm5, %v1764_v33  ;;  %v3379_v33 = vld [vmem:[%s4128_s6 + $0x68] sm:$0xff]  }
0x1011   :  { %3182 = vmatpush3.bf16.xpose.msra.mxu1 %v1822_v34  ;;  %3183 = vmatprep.mubr.msk.bf16.mxu1 %vm3610_vm0, %v3608_v4  ;;  %v3380_v34 = vld [vmem:[%s4128_s6 + $0x70] sm:$0xff]  }
0x1012   :  { %3187 = vmatprep.subr.bf16.mxu1 %v3608_v4 }
0x1018   :  { %3184 = vmatmul.mubr.msk.bf16.vlgmr.msra.gmra.mrb[44].mxu1 %vm413_vm1, %v1814_v35 }
0x1019   :  { %3189 = vmatprep.mubr.msk.bf16.mxu1 %vm3610_vm0, %v3608_v4 }
0x1035   :  { %v1984_v44 = vpop.xlane.xlu0 %1983 }
0x1036   :  { %v1985_v45 = vsub.f32 %v1981_v26, %v1984_v44 }
0x1038   :  { %v1986_v5 = vmul.f32 1.442695, %v1985_v45 }
0x103a   :  { %3462 = vpow2.f32 %v1986_v5 }
0x1044   :  { %v3463_v57 = vpop.eup %3462 }
0x1045   :  { %v1988_v56 = vsel %vm462_vm5, %v3463_v57, 0.0 }
0x1046   :  { %v2087_v38 = vpop.f32.mrb[28].mxu0 }
0x1047   :  { %v2093_v39 = vmul.f32 0.125, %v2087_v38  ;;  %v3209_v1 = vpop.f32.mrb[29].mxu0 }
0x1048   :  { %v2090_v40 = vpop.f32.mrb[30].mxu0 }
0x1049   :  { %v3210_v41 = vpop.f32.mrb[31].mxu0  ;;  %v2094_v42 = vadd.f32 %v2093_v39, %v3820_v24  ;;  %v3381_v40 = vld [vmem:[%s4128_s6 + $0x78] sm:$0xff]  }
0x104b   :  { %v2095_v43 = vsel %vm462_vm5, %v2094_v42, -inf }
0x104c   :  { %2096 = vmax.xlane.f32.xlu0 %v2095_v43 }
0x10d9   :  { %v2097_v58 = vpop.xlane.xlu0 %2096 }
0x10da   :  { %v2098_v60 = vsub.f32 %v2094_v42, %v2097_v58 }
0x10dc   :  { %v2099_v63 = vmul.f32 1.442695, %v2098_v60 }
0x10e3   :  { %v4015_v46 = vpop.f32.mrb[40].mxu1 }
0x10e4   :  { %v3179_v50 = vpop.f32.mrb[41].mxu1 }
0x10e5   :  { %v1809_v51 = vpop.f32.mrb[42].mxu1 }
0x10e6   :  { %v3180_v18 = vpop.f32.mrb[43].mxu1 }
0x10eb   :  { %v1858_v16 = vpop.f32.mrb[44].mxu1 }
0x10ec   :  { %v1864_v19 = vmul.f32 0.125, %v1858_v16  ;;  %v3185_v48 = vpop.f32.mrb[45].mxu1 }
0x10ed   :  { %v1861_v49 = vpop.f32.mrb[46].mxu1 }
0x10ee   :  { %v3186_v52 = vpop.f32.mrb[47].mxu1  ;;  %v1865_v54 = vadd.f32 %v1864_v19, %v3825_v27 }
0x10f0   :  { %v1866_v24 = vsel %vm462_vm5, %v1865_v54, -inf }
0x10f1   :  { %1867 = vmax.xlane.f32.xlu1 %v1866_v24 }
0x10f5   :  { %1989 = vadd.xlane.f32.xlu1 %v1988_v56 }
0x1106   :  { %1879 = vrot.lane.b32.xlu1 %v3979_v53, %s3606_s4 }
0x117e   :  { %v1868_v61 = vpop.xlane.xlu1 %1867 }
0x117f   :  { %v1869_v62 = vsub.f32 %v1865_v54, %v1868_v61  ;;  %v2897_v54 = vld [vmem:[%s4129_s7 + $0x1] ss:$0 sm:$0xff] }
0x1181   :  { %v1870_v0 = vmul.f32 1.442695, %v1869_v62 }
0x1182   :  { %v1990_v2 = vpop.xlane.xlu1 %1989 }
0x1183   :  { %3464 = vpow2.f32 %v1870_v0  ;;  %v3382_v0 = vld [vmem:[#allocation7 + $0x80] ss:$8 sps:$4 sm:$0xff]  }
0x1184   :  { %3466 = vpow2.f32 %v2099_v63 }
0x1186   :  { %v1880_v27 = vpop.permute.xlu1 %1879 }
0x1187   :  { %v1885_v3 = vsel %vm479_vm2, %v1880_v27, 0  ;;  %v3385_v27 = vld [vmem:[#allocation7 + $0x90] ss:$8 sps:$4 sm:$0xff]  }
0x1188   :  { %3188 = vmatpush3.bf16.msra.mxu1 %v1885_v3 }
0x1189   :  { %3199 = vmatprep.subr.bf16.mxu1 %v3608_v4 }
0x118d   :  { %v3465_v6 = vpop.eup %3464 }
0x118e   :  { %v1872_v7 = vsel %vm462_vm5, %v3465_v6, 0.0  ;;  %v3467_v8 = vpop.eup %3466 }
0x118f   :  { %1873 = vadd.xlane.f32.xlu0 %v1872_v7  ;;  %v2101_v53 = vsel %vm462_vm5, %v3467_v8, 0.0 }
0x1193   :  { %2102 = vadd.xlane.f32.xlu0 %v2101_v53 }
0x11a9   :  { %2108 = vrot.lane.b32.xlu0 %v1994_v9, %s3606_s4 }
0x121c   :  { %v1874_v10 = vpop.xlane.xlu0 %1873 }
0x121d   :  { %3468 = vrcp.f32 %v1874_v10 }
0x121e   :  { %3470 = vrcp.f32 %v1990_v2  ;;  %v3387_v2 = vld [vmem:[#allocation7 + $0x94] ss:$8 sps:$4 sm:$0xff]  }
0x1220   :  { %v2103_v11 = vpop.xlane.xlu0 %2102 }
0x1221   :  { %3472 = vrcp.f32 %v2103_v11  ;;  %v3388_v11 = vld [vmem:[#allocation7 + $0xa0] ss:$8 sps:$4 sm:$0xff]  }
0x1224   :  { %v2109_v20 = vpop.permute.xlu0 %2108 }
0x1225   :  { %v2114_v23 = vsel %vm479_vm2, %v2109_v20, 0  ;;  %v3402_v20 = vld [vmem:[#allocation7 + $0xe4] ss:$8 sps:$4 sm:$0xff]  }
0x1227   :  { %v3469_v12 = vpop.eup %3468 }
0x1228   :  { %v1876_v13 = vmul.f32 %v3469_v12, %v3465_v6  ;;  %v3471_v15 = vpop.eup %3470  ;;  %v3393_v12 = vld [vmem:[#allocation7 + $0xb4] ss:$8 sps:$4 sm:$0xff]  }
0x1229   :  { %v1992_v47 = vmul.f32 %v3471_v15, %v3463_v57  ;;  %v3394_v15 = vld [vmem:[#allocation7 + $0xc0] ss:$8 sps:$4 sm:$0xff]  }
0x122a   :  { %v1877_v14 = vpack.c.bf16 %v1876_v13, %v1876_v13  ;;  %v3391_v13 = vld [vmem:[#allocation7 + $0xb0] ss:$8 sps:$4 sm:$0xff]  }
0x122b   :  { %v1993_v21 = vpack.c.bf16 %v1992_v47, %v1992_v47  ;;  %v3473_v22 = vpop.eup %3472  ;;  %v3397_v47 = vld [vmem:[#allocation7 + $0xd0] ss:$8 sps:$4 sm:$0xff]  }
0x122c   :  { %3190 = vmatmul.mubr.msk.bf16.vlgmr.msra.gmra.mrb[48].mxu1 %vm462_vm5, %v1877_v14  ;;  %v2105_v25 = vmul.f32 %v3473_v22, %v3467_v8  ;;  %v3396_v14 = vld [vmem:[#allocation7 + $0xc4] ss:$8 sps:$4 sm:$0xff]   ;;  %v3405_v22 = vld [vmem:[#allocation7 + $0xf4] ss:$8 sps:$4 sm:$0xff]  }
0x122d   :  { %3200 = vmatpush3.bf16.msra.mxu1 %v1999_v17  ;;  %3201 = vmatprep.mubr.msk.bf16.mxu1 %vm3610_vm0, %v3608_v4  ;;  %v3399_v17 = vld [vmem:[#allocation7 + $0xd4] ss:$8 sps:$4 sm:$0xff]  }
0x122e   :  { %3211 = vmatprep.subr.bf16.mxu1 %v3608_v4  ;;  %v2106_v26 = vpack.c.bf16 %v2105_v25, %v2105_v25 }
0x1234   :  { %3202 = vmatmul.mubr.msk.bf16.vlgmr.msra.gmra.mrb[52].mxu1 %vm462_vm5, %v1993_v21  ;;  %v3400_v21 = vld [vmem:[#allocation7 + $0xe0] ss:$8 sps:$4 sm:$0xff]  }
0x1235   :  { %3212 = vmatpush3.bf16.msra.mxu1 %v2114_v23  ;;  %3213 = vmatprep.mubr.msk.bf16.mxu1 %vm3610_vm0, %v3608_v4  ;;  %v3403_v23 = vld [vmem:[#allocation7 + $0xf0] ss:$8 sps:$4 sm:$0xff]  }
0x123c   :  { %3214 = vmatmul.mubr.msk.bf16.vlgmr.msra.gmra.mrb[56].mxu1 %vm462_vm5, %v2106_v26 }
0x123d   :  { %2463 = vmatprep.mubr.bf16.mxu1 %v3609_v30  ;;  %v3377_v30 = vld [vmem:[%s4128_s6 + $0x58] sm:$0xff]  }
0x123e   :  { %3224 = vmatpush3.bf16.msra.mxu0 %v3377_v30 }
0x123f   :  { %3225 = vmatprep.subr.bf16.mxu0 %v3608_v4 }
0x1242   :  { %3226 = vmatpush3.bf16.msra.mxu0 %v3378_v32 }
0x1243   :  { %3227 = vmatprep.subr.bf16.mxu0 %v3608_v4 }
0x1246   :  { %3228 = vmatpush3.bf16.msra.mxu0 %v3379_v33  ;;  %v2908_v33 = vld [vmem:[%s4130_s8 + $0x1] ss:$0 sm:$0xff] }
0x1247   :  { %3229 = vmatprep.subr.bf16.mxu0 %v3608_v4 }
0x124a   :  { %3230 = vmatpush3.bf16.msra.mxu0 %v3380_v34 }
0x124b   :  { %3231 = vmatprep.subr.bf16.mxu0 %v3608_v4 }
0x124e   :  { %3232 = vmatpush3.bf16.msra.mxu0 %v3381_v40 }
0x12ff   :  { %v1921_v35 = vpop.f32.mrb[48].mxu1 }
0x1300   :  { %v3191_v38 = vpop.f32.mrb[49].mxu1 }
0x1301   :  { %v1924_v39 = vpop.f32.mrb[50].mxu1 }
0x1302   :  { %v3192_v1 = vpop.f32.mrb[51].mxu1 }
0x1303   :  { %v2909_v1 = vld [vmem:[%s4143_s30 + $0x1] ss:$0 sm:$0xff] }
0x1307   :  { %v2035_v41 = vpop.f32.mrb[52].mxu1 }
0x1308   :  { %v3203_v42 = vpop.f32.mrb[53].mxu1 }
0x1309   :  { %v2038_v43 = vpop.f32.mrb[54].mxu1 }
0x130a   :  { %v3204_v44 = vpop.f32.mrb[55].mxu1 }
0x130b   :  { %v3406_v44 = vld [vmem:[#allocation9 + $0xc0] sm:$0xff]  }
0x130c   :  { %3039 = vmatprep.subr.bf16.mxu0 %v3406_v44 }
0x130f   :  { %v2150_v45 = vpop.f32.mrb[56].mxu1 }
0x1310   :  { %v3257_v5 = vpack.i.bf16 %v2150_v45, %v1921_v35  ;;  %v3215_v50 = vpop.f32.mrb[57].mxu1  ;;  %v3407_v45 = vld [vmem:[#allocation9 + $0x80] sm:$0xff]  }
0x1311   :  { %v2153_v51 = vpop.f32.mrb[58].mxu1  ;;  %v3409_v50 = vld [vmem:[#allocation9 + $0x88] sm:$0xff]  }
0x1312   :  { %3258 = vrot.lane.b32.xlu1 %v3257_v5, %s3606_s4  ;;  %v3216_v4 = vpop.f32.mrb[59].mxu1  ;;  %v3408_v5 = vld [vmem:[#allocation9 + $0xc8] sm:$0xff]   ;;  %v3410_v51 = vld [vmem:[#allocation9 + $0xd0] sm:$0xff]  }
0x1313   :  { %v3411_v4 = vld [vmem:[#allocation9 + $0x90] sm:$0xff]  }
0x1384   :  { %v3259_v18 = vpop.permute.xlu1 %3258 }
0x1385   :  { %v3261_v16 = vunpack.i.h.bf16 %v3259_v18  ;;  %v3260_v19 = vunpack.i.l.bf16 %v3259_v18  ;;  %v3412_v18 = vld [vmem:[#allocation9 + $0xd8] sm:$0xff]  }
0x1387   :  { %v2160_v48 = vsel %vm413_vm1, %v2035_v41, %v3261_v16  ;;  %v1931_v49 = vsel %vm413_vm1, %v4015_v46, %v3260_v19  ;;  %v3384_v46 = vld [vmem:[#allocation7 + $0x84] ss:$8 sps:$4 sm:$0xff]   ;;  %v3413_v16 = vld [vmem:[#allocation9 + $0x98] sm:$0xff]  }
0x1388   :  { %v2178_v52 = vpack.c.bf16 %v2160_v48, %v1931_v49  ;;  %2431 = vmatprep.subr.bf16.mxu1 %v3384_v46  ;;  %v3414_v19 = vld [vmem:[#allocation9 + $0xe0] sm:$0xff]   ;;  %v3416_v49 = vld [vmem:[#allocation9 + $0xe8] sm:$0xff]  }
0x1389   :  { %2432 = vmatpush1.bf16.msra.mxu1 %v3382_v0  ;;  %v3415_v48 = vld [vmem:[#allocation9 + $0xa0] sm:$0xff]  }
0x138a   :  { %3234 = vmatmul.mubr.bf16.vlgmr.msra.gmra.mrb[32].mxu0 %v2178_v52  ;;  %2433 = vmatprep.subr.bf16.mxu1 %v3387_v2  ;;  %v3417_v52 = vld [vmem:[#allocation9 + $0xa8] sm:$0xff]  }
0x138b   :  { %3040 = vmatpush3.bf16.msra.mxu0 %v3407_v45 }
0x138c   :  { %3041 = vmatprep.subr.bf16.mxu0 %v3408_v5 }
0x138d   :  { %2434 = vmatpush1.bf16.msra.mxu1 %v3385_v27 }
0x138f   :  { %3042 = vmatpush3.bf16.msra.mxu0 %v3409_v50 }
0x1390   :  { %3043 = vmatprep.subr.bf16.mxu0 %v3410_v51  ;;  %v2928_v51 = vld [vmem:[%s4135_s13 + $0x1] ss:$0 sm:$0xff]  ;;  %s2740_s13 = scalar_select %p2739_p1, 1, 0 }
0x1392   :  { %s2741_s2 = scvt.s32.f32 %s2740_s13 }
0x1393   :  { %3044 = vmatpush3.bf16.msra.mxu0 %v3411_v4 }
0x1394   :  { %3045 = vmatprep.subr.bf16.mxu0 %v3412_v18 }
0x1397   :  { %3046 = vmatpush3.bf16.msra.mxu0 %v3413_v16 }
0x1398   :  { %3047 = vmatprep.subr.bf16.mxu0 %v3414_v19 }
0x139b   :  { %3048 = vmatpush3.bf16.msra.mxu0 %v3415_v48 }
0x139c   :  { %3049 = vmatprep.subr.bf16.mxu0 %v3416_v49 }
0x139f   :  { %3050 = vmatpush3.bf16.msra.mxu0 %v3417_v52 }
0x145d   :  { %v2269_v24 = vpop.f32.mrb[32].mxu0 }
0x145e   :  { %v2270_v57 = vadd.f32 %v2897_v54, %v2269_v24  ;;  %v3235_v56 = vpop.f32.mrb[33].mxu0  ;;  %v3419_v24 = vld [vmem:[#allocation9 + $0xb0] sm:$0xff]  }
0x145f   :  { %v2272_v58 = vpop.f32.mrb[34].mxu0  ;;  %v3421_v56 = vld [vmem:[#allocation9 + $0xb8] sm:$0xff]  }
0x1460   :  { %v2273_v60 = vadd.f32 %v2897_v54, %v2272_v58  ;;  %v3236_v61 = vpop.f32.mrb[35].mxu0  ;;  %v2276_v62 = vadd.f32 %v2270_v57, %v3957_v36  ;;  %v3418_v54 = vld [vmem:[#allocation9 + $0xf0] sm:$0xff]   ;;  %v3420_v57 = vld [vmem:[#allocation9 + $0xf8] sm:$0xff]   ;;  %v2910_v58 = vld [vmem:[%s4133_s11 + $0x2] sm:$0x3] }
0x1461   :  { %3051 = vmatprep.subr.bf16.mxu0 %v3418_v54  ;;  %v2348_v61 = vrot.slane %v2910_v58, %v3787_v55 }
0x1462   :  { %2282 = vadd.xlane.f32.xlu1 %v2276_v62  ;;  %v2277_v63 = vadd.f32 %v2273_v60, %v3959_v37  ;;  %v3390_v37 = vld [vmem:[#allocation7 + $0xa4] ss:$8 sps:$4 sm:$0xff]   ;;  %3052 = vmatpush3.bf16.msra.mxu0 %v3419_v24  ;;  %v2344_v60 = vrot.slane %v2910_v58, %v3795_v59 }
0x1463   :  { %2435 = vmatprep.subr.bf16.mxu1 %v3390_v37  ;;  %3053 = vmatprep.subr.bf16.mxu0 %v3420_v57 }
0x1464   :  { %2284 = vadd.xlane.f32.xlu0 %v2277_v63  ;;  %2436 = vmatpush1.bf16.msra.mxu1 %v3388_v11 }
0x1465   :  { %2437 = vmatprep.subr.bf16.mxu1 %v3393_v12 }
0x1466   :  { %3054 = vmatpush3.bf16.msra.mxu0 %v3421_v56 }
0x1468   :  { %2438 = vmatpush1.bf16.msra.mxu1 %v3391_v13 }
0x1469   :  { %2439 = vmatprep.subr.bf16.mxu1 %v3396_v14 }
0x146c   :  { %2440 = vmatpush1.bf16.msra.mxu1 %v3394_v15 }
0x146d   :  { %2441 = vmatprep.subr.bf16.mxu1 %v3399_v17 }
0x1470   :  { %2442 = vmatpush1.bf16.msra.mxu1 %v3397_v47 }
0x1471   :  { %2443 = vmatprep.subr.bf16.mxu1 %v3402_v20 }
0x1474   :  { %2444 = vmatpush1.bf16.msra.mxu1 %v3400_v21 }
0x1475   :  { %2445 = vmatprep.subr.bf16.mxu1 %v3405_v22 }
0x1478   :  { %2446 = vmatpush1.bf16.msra.mxu1 %v3403_v23 }
0x14ef   :  { %v2283_v3 = vpop.xlane.xlu1 %2282 }
0x14f0   :  { %v2286_v6 = vmul.f32 0.0078125, %v2283_v3 }
0x14f1   :  { %v2285_v7 = vpop.xlane.xlu0 %2284 }
0x14f2   :  { %v2288_v8 = vsub.f32 %v2276_v62, %v2286_v6  ;;  %v2287_v53 = vmul.f32 0.0078125, %v2285_v7 }
0x14f4   :  { %v2289_v9 = vsub.f32 %v2277_v63, %v2287_v53  ;;  %v2290_v10 = vmul.f32 %v2288_v8, %v2288_v8 }
0x14f6   :  { %2292 = vadd.xlane.f32.xlu0 %v2290_v10  ;;  %v2291_v36 = vmul.f32 %v2289_v9, %v2289_v9 }
0x14f8   :  { %2294 = vadd.xlane.f32.xlu1 %v2291_v36 }
0x1583   :  { %v2293_v25 = vpop.xlane.xlu0 %2292 }
0x1584   :  { %v2296_v26 = vmul.f32 0.0078125, %v2293_v25 }
0x1585   :  { %v2295_v28 = vpop.xlane.xlu1 %2294 }
0x1586   :  { %v2298_v29 = vadd.f32 1e-12, %v2296_v26  ;;  %v2297_v31 = vmul.f32 0.0078125, %v2295_v28 }
0x1588   :  { %3474 = vrsqrt.f32 %v2298_v29  ;;  %v2299_v30 = vadd.f32 1e-12, %v2297_v31 }
0x158a   :  { %3476 = vrsqrt.f32 %v2299_v30 }
0x1592   :  { %v3475_v32 = vpop.eup %3474 }
0x1593   :  { %v2302_v34 = vmul.f32 %v3475_v32, %v2288_v8 }
0x1594   :  { %v3477_v35 = vpop.eup %3476 }
0x1595   :  { %v2303_v38 = vmul.f32 %v3477_v35, %v2289_v9  ;;  %v2310_v39 = vmul.f32 %v2908_v33, %v2302_v34 }
0x1597   :  { %v2311_v40 = vmul.f32 %v2908_v33, %v2303_v38  ;;  %v4086_v41 = vadd.f32 %v2909_v1, %v2310_v39 }
0x1599   :  { %v4088_v42 = vadd.f32 %v2909_v1, %v2311_v40 }
0x159b   :  { %v2337_v43 = vpack.c.bf16 %v4088_v42, %v4086_v41 }
0x159d   :  { %2464 = vmatmul.mubr.bf16.vlgmr.msra.gmra.mrb[60].mxu1 %v2337_v43 }
0x1670   :  { %v2465_v62 = vpop.f32.mrb[60].mxu1 }
0x1671   :  { %v2466_v63 = vadd.f32 %v2465_v62, %v2344_v60  ;;  %v2467_v0 = vpop.f32.mrb[61].mxu1 }
0x1672   :  { %v2468_v46 = vadd.f32 %v2467_v0, %v2348_v61  ;;  %v2469_v2 = vpop.f32.mrb[62].mxu1 }
0x1673   :  { %v2478_v27 = vmul.f32 0.044715, %v2466_v63  ;;  %v2470_v3 = vadd.f32 %v2469_v2, %v2344_v60  ;;  %v2471_v6 = vpop.f32.mrb[63].mxu1  ;;  %v2474_v32 = vmul.f32 0.5, %v2466_v63 }
0x1674   :  { %v2479_v7 = vmul.f32 0.044715, %v2468_v46  ;;  %v2472_v8 = vadd.f32 %v2471_v6, %v2348_v61  ;;  %v2475_v35 = vmul.f32 0.5, %v2468_v46 }
0x1675   :  { %v2482_v53 = vmul.f32 %v2478_v27, %v2466_v63  ;;  %v2480_v9 = vmul.f32 0.044715, %v2470_v3  ;;  %v2476_v33 = vmul.f32 0.5, %v2470_v3 }
0x1676   :  { %v2483_v10 = vmul.f32 %v2479_v7, %v2468_v46  ;;  %v2481_v36 = vmul.f32 0.044715, %v2472_v8  ;;  %v2477_v38 = vmul.f32 0.5, %v2472_v8  ;;  %v2947_v7 = vld [vmem:[%s4136_s14 + $0x1] ss:$0 sm:$0xff]  ;;  %s3568_s14 = scalar_lea.vmem %s2757_s24, 32 }
0x1677   :  { %v2486_v37 = vmul.f32 %v2482_v53, %v2466_v63  ;;  %v2484_v11 = vmul.f32 %v2480_v9, %v2470_v3  ;;  %p3569_p3 = scmp.ne.s32.totalorder %s2757_s24, %s3568_s14  ;;  %p3574_p5 = scmp.lt.s32.totalorder %s3568_s14, %s3568_s14 }
0x1678   :  { %v2487_v12 = vmul.f32 %v2483_v10, %v2468_v46  ;;  %v2485_v59 = vmul.f32 %v2481_v36, %v2472_v8  ;;  %v2948_v36 = vld [vmem:[%s4137_s15 + $0x1] ss:$0 sm:$0xff] }
0x1679   :  { %v2490_v13 = vadd.f32 %v2486_v37, %v2466_v63  ;;  %v2488_v55 = vmul.f32 %v2484_v11, %v2470_v3  ;;  %v2742_v11 = vstv %s2741_s2  ;;  %p3575_p6 = por %p3574_p5, %p3573_p4 }
0x167a   :  { %v2489_v14 = vmul.f32 %v2485_v59, %v2472_v8  ;;  %v2491_v15 = vadd.f32 %v2487_v12, %v2468_v46 }
0x167b   :  { %v2494_v17 = vmul.f32 0.7978846, %v2490_v13  ;;  %v2492_v47 = vadd.f32 %v2488_v55, %v2470_v3  ;;  %v2737_v13 = vstv %s2736_s28  ;;  %p3576_p7 = pnand %p3575_p6, %p3569_p3 }
0x167c   :  { %v2493_v20 = vadd.f32 %v2489_v14, %v2472_v8  ;;  %v2495_v21 = vmul.f32 0.7978846, %v2491_v15 }
0x167d   :  { %3478 = vtanh.f32 %v2494_v17  ;;  %v2496_v22 = vmul.f32 0.7978846, %v2492_v47 }
0x167e   :  { %v2497_v23 = vmul.f32 0.7978846, %v2493_v20  ;;  %3480 = vtanh.f32 %v2495_v21 }
0x167f   :  { %3482 = vtanh.f32 %v2496_v22 }
0x1680   :  { %3484 = vtanh.f32 %v2497_v23 }
0x1687   :  { %v3479_v25 = vpop.eup %3478 }
0x1688   :  { %v3481_v26 = vpop.eup %3480  ;;  %v2502_v28 = vadd.f32 1.0, %v3479_v25 }
0x1689   :  { %v3483_v29 = vpop.eup %3482  ;;  %v2503_v31 = vadd.f32 1.0, %v3481_v26 }
0x168a   :  { %v3485_v30 = vpop.eup %3484  ;;  %v2504_v34 = vadd.f32 1.0, %v3483_v29  ;;  %v2506_v1 = vmul.f32 %v2502_v28, %v2474_v32 }
0x168b   :  { %v2505_v39 = vadd.f32 1.0, %v3485_v30  ;;  %v2507_v43 = vmul.f32 %v2503_v31, %v2475_v35 }
0x168c   :  { %v2508_v40 = vmul.f32 %v2504_v34, %v2476_v33 }
0x168d   :  { %v2509_v44 = vmul.f32 %v2505_v39, %v2477_v38 }
0x168e   :  { %v2543_v45 = vpack.c.bf16 %v2508_v40, %v2506_v1 }
0x168f   :  { %v2544_v5 = vpack.c.bf16 %v2509_v44, %v2507_v43 }
0x1691   :  { %2681 = vmatprep.mubr.bf16.mxu0 %v2544_v5 }
0x1692   :  { %2682 = vmatmul.mubr.bf16.vlgmr.msra.gmra.mrb[36].mxu0 %v2543_v45 }
0x1765   :  { %v3055_v50 = vpop.f32.mrb[36].mxu0 }
0x1766   :  { %v3056_v4 = vpop.f32.mrb[37].mxu0 }
0x1767   :  { %v3057_v18 = vadd.f32 %v3056_v4, %v3055_v50  ;;  %v3058_v16 = vpop.f32.mrb[38].mxu0 }
0x1768   :  { %v3059_v19 = vpop.f32.mrb[39].mxu0 }
0x1769   :  { %v2684_v48 = vadd.f32 %v3057_v18, %v2928_v51  ;;  %v3060_v49 = vadd.f32 %v3059_v19, %v3058_v16 }
0x176b   :  { %v2687_v52 = vadd.f32 %v3060_v49, %v2928_v51  ;;  %v2690_v54 = vadd.f32 %v2684_v48, %v4086_v41 }
0x176d   :  { %2696 = vadd.xlane.f32.xlu1 %v2690_v54  ;;  %v2691_v24 = vadd.f32 %v2687_v52, %v4088_v42 }
0x176f   :  { %2698 = vadd.xlane.f32.xlu0 %v2691_v24 }
0x17fa   :  { %v2697_v57 = vpop.xlane.xlu1 %2696 }
0x17fb   :  { %v2700_v56 = vmul.f32 0.0078125, %v2697_v57 }
0x17fc   :  { %v2699_v58 = vpop.xlane.xlu0 %2698 }
0x17fd   :  { %v2702_v60 = vsub.f32 %v2690_v54, %v2700_v56  ;;  %v2701_v61 = vmul.f32 0.0078125, %v2699_v58 }
0x17ff   :  { %v2703_v62 = vsub.f32 %v2691_v24, %v2701_v61  ;;  %v2704_v63 = vmul.f32 %v2702_v60, %v2702_v60 }
0x1801   :  { %2706 = vadd.xlane.f32.xlu1 %v2704_v63  ;;  %v2705_v0 = vmul.f32 %v2703_v62, %v2703_v62 }
0x1803   :  { %2708 = vadd.xlane.f32.xlu0 %v2705_v0 }
0x188e   :  { %v2707_v46 = vpop.xlane.xlu1 %2706 }
0x188f   :  { %v2710_v2 = vmul.f32 0.0078125, %v2707_v46 }
0x1890   :  { %v2709_v27 = vpop.xlane.xlu0 %2708 }
0x1891   :  { %v2712_v41 = vadd.f32 1e-12, %v2710_v2  ;;  %v2711_v3 = vmul.f32 0.0078125, %v2709_v27 }
0x1893   :  { %3486 = vrsqrt.f32 %v2712_v41  ;;  %v2713_v42 = vadd.f32 1e-12, %v2711_v3 }
0x1895   :  { %3488 = vrsqrt.f32 %v2713_v42 }
0x189d   :  { %v3487_v6 = vpop.eup %3486 }
0x189e   :  { %v2716_v8 = vmul.f32 %v3487_v6, %v2702_v60 }
0x189f   :  { %v3489_v53 = vpop.eup %3488 }
0x18a0   :  { %v2717_v9 = vmul.f32 %v3489_v53, %v2703_v62  ;;  %v2724_v10 = vmul.f32 %v2947_v7, %v2716_v8 }
0x18a2   :  { %v2725_v37 = vmul.f32 %v2947_v7, %v2717_v9  ;;  %v2732_v12 = vadd.f32 %v2948_v36, %v2724_v10 }
0x18a4   :  { %v2733_v59 = vadd.f32 %v2948_v36, %v2725_v37  ;;  %v2738_v14 = vmul.f32 %v2737_v13, %v2732_v12 }
0x18a6   :  { %v2743_v55 = vmul.f32 %v2742_v11, %v2733_v59 }
0x18a8   :  { %v2745_v15 = vrot.slane %v2743_v55, 7 }
0x18aa   :  { %v2748_v17 = vsel %vm2747_vm6, %v2738_v14, %v2745_v15 }
0x18ab   :  { %2749 = vst [vmem:[#allocation10] sm:$0x3] %v2748_v17 }
0x18ac   :  { %3579 = shalt.err (!%p3576_p7)
}
0x18ad   :  { %s3580_s0 = scalar_lea.hbm %s4138_s16, 32 }
0x18ae   :  { %p3581_p8 = scmp.ne.s32.totalorder %s4138_s16, %s3580_s0  ;;  %p3584_p9 = scmp.lt.u32.totalorder %s3580_s0, %s4138_s16 }
0x18b0   :  { %p3586_p10 = pnand %p3584_p9, %p3581_p8 }
0x18b2   :  { %3589 = shalt.err (!%p3586_p10)
}
0x18b3   :  { %2759 = dma.vmem_to_hbm [thread:$0]  %s2757_s24, 32, %s4138_s16, [#allocation6]  }
0x18b4   :  { %3596 = dma.done.wait [#allocation6], 32  }
0x18b5   :  { %3597 = vsyncadd [#allocation6], 4294967264 }
0x18b6   :  { %2763 = vsyncpa [#allocation5], 1 }
0x18b7   :  { %2764 = vsyncpa [#allocation8], 1 }
0x18b8   :  { %2765 = vsyncpa [#allocation6], 1 }

</bundles_post_ra>
